<compile_context>
chip_gen: v7x
topology: tpu7x:2x2x1
jax: 0.10.0
libtpu: 0.0.40
codegen_flags: <defaults>
</compile_context>

<pallas_src>
import functools

import jax
import jax.numpy as jnp
from jax.experimental import pallas as pl
from jax.experimental.pallas import tpu as pltpu


def _round_up(x, m):
    return (x + m - 1) // m * m


def _cdiv(a, b):
    return -(-a // b)


def _vmem_capacity_bytes():
    """Best-effort physical VMEM query; falls back to 128 MiB."""
    try:
        info = pltpu.get_tpu_info()
        for name in ("vmem_capacity_bytes", "vmem_size_bytes", "vmem_bytes"):
            cap = getattr(info, name, None)
            if cap:
                return int(cap)
    except Exception:
        pass
    return 128 << 20


def _device_defaults():
    """Generation-aware tile defaults + usable VMEM budget."""
    cap = _vmem_capacity_bytes()
    if cap <= (64 << 20):
        # v7x-like: 64 MiB VMEM, 2 TensorCores, high HBM BW (ridge ~310 fl/B).
        return dict(tm=512, tk=256, budget=int(cap * 0.80), two_cores=True)
    # v5e / v6e: 128 MiB VMEM, single TensorCore.
    return dict(tm=1024, tk=512,
                budget=min(cap - (24 << 20), 110 << 20), two_cores=False)


def _pick_tk(hidden, tk_target):
    """Largest divisor of hidden <= tk_target, preferring 256/128 multiples."""
    tk_target = min(tk_target, hidden)
    if hidden % tk_target == 0:
        return tk_target
    best128 = None
    for d in range(tk_target, 0, -1):
        if hidden % d != 0:
            continue
        if d % 256 == 0:
            return d
        if best128 is None and d % 128 == 0:
            best128 = d
    if best128 is not None:
        return best128
    # TODO(synk): awkward hidden (no 128-multiple divisor) falls back to a
    # single un-tiled hidden step; a masked cdiv grid would be the alternative.
    return hidden


# ---------------------------------------------------------------------------
# Kernels
# ---------------------------------------------------------------------------
def ffn_single_kernel(x_ref, w1_ref, b1_ref, w2_ref, b2_ref, o_ref):
    # Whole hidden dim resident: no accumulator scratch needed.
    x = x_ref[...].astype(w1_ref.dtype)
    h = jnp.dot(x, w1_ref[...], preferred_element_type=jnp.float32)
    h = jnp.maximum(h + b1_ref[...], 0.0)
    # TODO(synk): dropout is a no-op in eval mode; training-mode stochastic
    # dropout (pltpu.prng_random_bits) is intentionally not applied here.
    out = jnp.dot(h.astype(w2_ref.dtype), w2_ref[...],
                  preferred_element_type=jnp.float32)
    o_ref[...] = (out + b2_ref[...]).astype(o_ref.dtype)


def ffn_reduce_kernel(x_ref, w1_ref, b1_ref, w2_ref, b2_ref, o_ref, acc_ref,
                      *, tk):
    # x_ref:  (tm, d_model)     w1_ref: (d_model, tk)     b1_ref: (1, hidden)
    # w2_ref: (tk, d_model)     b2_ref: (1, d_model)
    # o_ref:  (tm, d_model)     acc_ref: (tm, d_model) f32 scratch
    k = pl.program_id(1)

    @pl.when(k == 0)
    def _():
        # Fold b2 into the accumulator init (saves an epilogue add).
        acc_ref[...] = jnp.broadcast_to(b2_ref[...], acc_ref.shape)

    # linear1 on this hidden slice -> bias -> ReLU (f32 elementwise).
    x = x_ref[...].astype(w1_ref.dtype)         # cast once, in-kernel
    h = jnp.dot(x, w1_ref[...], preferred_element_type=jnp.float32)
    start = pl.multiple_of(k * tk, tk)
    h = jnp.maximum(h + b1_ref[:, pl.ds(start, tk)], 0.0)
    # TODO(synk): dropout is identity in eval mode; not applied.

    # linear2 contribution of this hidden slice, accumulated in f32.
    acc_ref[...] += jnp.dot(h.astype(w2_ref.dtype), w2_ref[...],
                            preferred_element_type=jnp.float32)

    @pl.when(k == pl.num_programs(1) - 1)
    def _():
        o_ref[...] = acc_ref[...].astype(o_ref.dtype)


# ---------------------------------------------------------------------------
# Wrapper
# ---------------------------------------------------------------------------
@functools.partial(jax.jit, static_argnames=("tm", "tk", "compute_dtype"))
def positionwise_ffn(x, w1, b1, w2, b2, *, tm=None, tk=None,
                     compute_dtype=jnp.bfloat16):
    """x: [batch, seq, d_model] -> [batch, seq, d_model]."""
    batch, seq, d_model = x.shape
    hidden = w1.shape[1]
    n_tokens = batch * seq
    out_dtype = x.dtype

    # ---- generation-aware defaults ------------------------------------------
    dd = _device_defaults()
    if tm is None:
        tm = dd["tm"]
    if tk is None:
        tk = dd["tk"]
    vmem_budget = dd["budget"]

    # ---- tiling choices ------------------------------------------------------
    tk = _pick_tk(hidden, tk)
    tm = min(tm, _round_up(n_tokens, 16))
    if dd["two_cores"] and n_tokens >= 256:
        # >=2 token tiles so the "parallel" axis can split across both TCs.
        tm = min(tm, _round_up(_cdiv(n_tokens, 2), 16))
    tm = _round_up(tm, 16)

    # ---- dtype plumbing: low-precision matmul inputs, f32 accumulation ------
    # x stays in its HBM dtype (cast to compute dtype inside the kernel).
    w_dtype = compute_dtype if compute_dtype is not None else w1.dtype
    w1c = w1.astype(w_dtype)
    w2c = w2.astype(w_dtype)
    b1_2d = b1.reshape(1, hidden).astype(jnp.float32)
    b2_2d = b2.reshape(1, d_model).astype(jnp.float32)

    x_isz = jnp.dtype(x.dtype).itemsize
    w_isz = jnp.dtype(w_dtype).itemsize
    out_isz = jnp.dtype(out_dtype).itemsize

    # ---- VMEM estimate (double-buffered tiles + scratch + in-kernel temps) --
    def vmem_need(tm_, tk_):
        need = 2 * (tm_ * d_model * x_isz            # x tile (HBM dtype)
                    + d_model * tk_ * w_isz          # W1 slice
                    + tk_ * d_model * w_isz          # W2 slice
                    + (hidden + d_model) * 4         # biases (resident, tiny)
                    + tm_ * d_model * out_isz)       # output tile
        need += tm_ * d_model * 4                    # f32 accumulator scratch
        need += tm_ * tk_ * (4 + w_isz)              # h (f32) + its cast copy
        if x_isz != w_isz:
            need += tm_ * d_model * w_isz            # in-kernel x cast copy
        return need

    while vmem_need(tm, tk) > vmem_budget and tm > 128:
        tm = _round_up(max(128, tm // 2), 16)

    n_pad = _round_up(n_tokens, tm)
    x2d = x.reshape(n_tokens, d_model)
    if n_pad != n_tokens:
        x2d = jnp.pad(x2d, ((0, n_pad - n_tokens), (0, 0)))

    n_i = n_pad // tm
    n_k = hidden // tk

    need = vmem_need(tm, tk)
    vmem_limit = int(min(max(int(1.25 * need) + (4 << 20), 8 << 20),
                         vmem_budget))

    w_streams = 1 if n_k == 1 else n_i   # weights re-DMA'd per token tile
    cost = pl.CostEstimate(
        flops=2 * 2 * n_pad * d_model * hidden,
        transcendentals=0,
        bytes_accessed=(n_pad * d_model * x_isz
                        + (w1c.size + w2c.size) * w_isz * w_streams
                        + (hidden + d_model) * 4
                        + n_pad * d_model * out_isz),
    )

    if n_k == 1:
        # Single hidden step: scratch-free kernel, weights resident across i.
        out2d = pl.pallas_call(
            ffn_single_kernel,
            out_shape=jax.ShapeDtypeStruct((n_pad, d_model), out_dtype),
            grid_spec=pltpu.PrefetchScalarGridSpec(
                num_scalar_prefetch=0,
                grid=(n_i,),
                in_specs=[
                    pl.BlockSpec((tm, d_model), lambda i: (i, 0)),     # x tile
                    pl.BlockSpec((d_model, hidden), lambda i: (0, 0)),  # W1
                    pl.BlockSpec((1, hidden), lambda i: (0, 0)),        # b1
                    pl.BlockSpec((hidden, d_model), lambda i: (0, 0)),  # W2
                    pl.BlockSpec((1, d_model), lambda i: (0, 0)),       # b2
                ],
                out_specs=pl.BlockSpec((tm, d_model), lambda i: (i, 0)),
            ),
            compiler_params=pltpu.CompilerParams(
                dimension_semantics=("parallel",),
                vmem_limit_bytes=vmem_limit,
            ),
            cost_estimate=cost,
        )(x2d, w1c, b1_2d, w2c, b2_2d)
    else:
        out2d = pl.pallas_call(
            functools.partial(ffn_reduce_kernel, tk=tk),
            out_shape=jax.ShapeDtypeStruct((n_pad, d_model), out_dtype),
            grid_spec=pltpu.PrefetchScalarGridSpec(
                num_scalar_prefetch=0,
                grid=(n_i, n_k),                      # k innermost (reduction)
                in_specs=[
                    pl.BlockSpec((tm, d_model), lambda i, k: (i, 0)),   # x
                    pl.BlockSpec((d_model, tk), lambda i, k: (0, k)),   # W1 slc
                    pl.BlockSpec((1, hidden), lambda i, k: (0, 0)),     # b1 res
                    pl.BlockSpec((tk, d_model), lambda i, k: (k, 0)),   # W2 slc
                    pl.BlockSpec((1, d_model), lambda i, k: (0, 0)),    # b2
                ],
                out_specs=pl.BlockSpec((tm, d_model), lambda i, k: (i, 0)),
                scratch_shapes=[pltpu.VMEM((tm, d_model), jnp.float32)],
            ),
            compiler_params=pltpu.CompilerParams(
                dimension_semantics=("parallel", "arbitrary"),
                vmem_limit_bytes=vmem_limit,
            ),
            cost_estimate=cost,
        )(x2d, w1c, b1_2d, w2c, b2_2d)

    return out2d[:n_tokens].reshape(batch, seq, d_model)


def init_params(key, d_model, hidden, dtype=jnp.float32):
    """Deterministic init mirroring nn.Linear: U(-1/sqrt(fan_in), 1/sqrt(fan_in))."""
    k1, k2, k3, k4 = jax.random.split(key, 4)
    bound1 = 1.0 / (d_model ** 0.5)
    bound2 = 1.0 / (hidden ** 0.5)
    # stored as [in_features, out_features] (transpose of PyTorch's weight)
    w1 = jax.random.uniform(k1, (d_model, hidden), dtype, -bound1, bound1)
    b1 = jax.random.uniform(k2, (hidden,), dtype, -bound1, bound1)
    w2 = jax.random.uniform(k3, (hidden, d_model), dtype, -bound2, bound2)
    b2 = jax.random.uniform(k4, (d_model,), dtype, -bound2, bound2)
    return w1, b1, w2, b2


if __name__ == "__main__":
    # Small but lane-aligned shapes: d_model and hidden are multiples of 128.
    batch, seq, d_model, hidden = 2, 128, 128, 512

    key = jax.random.PRNGKey(0)
    kx, kp = jax.random.split(key)
    x = jax.random.normal(kx, (batch, seq, d_model), jnp.float32)
    w1, b1, w2, b2 = init_params(kp, d_model, hidden)

    # References.
    x2d = x.reshape(-1, d_model)
    ref_f32 = (jnp.maximum(x2d @ w1 + b1, 0.0) @ w2 + b2
               ).reshape(batch, seq, d_model)
    h_bf = jnp.maximum(
        jnp.dot(x2d.astype(jnp.bfloat16), w1.astype(jnp.bfloat16),
                preferred_element_type=jnp.float32) + b1, 0.0)
    ref_bf16 = (jnp.dot(h_bf.astype(jnp.bfloat16), w2.astype(jnp.bfloat16),
                        preferred_element_type=jnp.float32) + b2
                ).reshape(batch, seq, d_model)

    # 1) generation-aware auto tiling, bf16 MXU inputs (x cast in-kernel).
    out = jax.block_until_ready(positionwise_ffn(x, w1, b1, w2, b2))
    assert out.shape == (batch, seq, d_model)
    assert out.dtype == x.dtype
    assert jnp.allclose(out, ref_bf16, atol=2e-3, rtol=2e-3)
    assert jnp.allclose(out, ref_f32, atol=5e-2, rtol=5e-2)

    # 2) force the hidden-axis reduction path (2 token tiles x 2 hidden slices).
    out_red = jax.block_until_ready(
        positionwise_ffn(x, w1, b1, w2, b2, tm=128, tk=256))
    assert jnp.allclose(out_red, ref_bf16, atol=2e-3, rtol=2e-3)

    # 3) f32 compute path must match the f32 reference tightly (both paths).
    out_f32 = jax.block_until_ready(
        positionwise_ffn(x, w1, b1, w2, b2, tk=256, compute_dtype=jnp.float32))
    assert jnp.allclose(out_f32, ref_f32, atol=1e-4, rtol=1e-4)

    # 4) ragged token count exercises zero-padding of the token axis.
    xr = x[:, :100, :]
    out_r = jax.block_until_ready(
        positionwise_ffn(xr, w1, b1, w2, b2, compute_dtype=jnp.float32))
    ref_r = (jnp.maximum(xr.reshape(-1, d_model) @ w1 + b1, 0.0) @ w2 + b2
             ).reshape(batch, 100, d_model)
    assert jnp.allclose(out_r, ref_r, atol=1e-4, rtol=1e-4)

    print("KERNEL_OK")
</pallas_src>

<mosaic_0001>
module attributes {stable_mosaic.version = 11 : i64} {
  func.func @ffn_single_kernel(%arg0: i32, %arg1: memref<256x128xf32, #tpu.memory_space<vmem>>, %arg2: memref<128x512xbf16, #tpu.memory_space<vmem>>, %arg3: memref<1x512xf32, #tpu.memory_space<vmem>>, %arg4: memref<512x128xbf16, #tpu.memory_space<vmem>>, %arg5: memref<1x128xf32, #tpu.memory_space<vmem>>, %arg6: memref<256x128xf32, #tpu.memory_space<vmem>>) attributes {dimension_semantics = [#tpu.dimension_semantics<parallel>], iteration_bounds = array<i64: 1>, scalar_prefetch = 0 : i64, scratch_operands = 0 : i64, tpu.core_type = #tpu.core_type<tc>, window_params = [{transform_indices = @transform_0, window_bounds = array<i64: 256, 128>}, {pipeline_mode = #tpu.pipeline_mode<synchronous>, transform_indices = @transform_1, window_bounds = array<i64: 128, 512>}, {pipeline_mode = #tpu.pipeline_mode<synchronous>, transform_indices = @transform_2, window_bounds = array<i64: 1, 512>}, {pipeline_mode = #tpu.pipeline_mode<synchronous>, transform_indices = @transform_3, window_bounds = array<i64: 512, 128>}, {pipeline_mode = #tpu.pipeline_mode<synchronous>, transform_indices = @transform_4, window_bounds = array<i64: 1, 128>}, {transform_indices = @transform_5, window_bounds = array<i64: 256, 128>}]} {
    %c0 = arith.constant 0 : index
    %c0_0 = arith.constant 0 : index
    %0 = vector.load %arg1[%c0, %c0_0] : memref<256x128xf32, #tpu.memory_space<vmem>>, vector<256x128xf32>
    %1 = arith.truncf %0 : vector<256x128xf32> to vector<256x128xbf16>
    %c0_1 = arith.constant 0 : index
    %c0_2 = arith.constant 0 : index
    %2 = vector.load %arg2[%c0_1, %c0_2] : memref<128x512xbf16, #tpu.memory_space<vmem>>, vector<128x512xbf16>
    %cst = arith.constant dense<0.000000e+00> : vector<256x512xf32>
    %3 = tpu.matmul %1, %2, %cst {dimension_numbers = #tpu.dot_dimension_numbers<[1], [0], [0], [1], [0, 0, 1, 1], [], []>} : vector<256x128xbf16>, vector<128x512xbf16>, vector<256x512xf32> -> vector<256x512xf32>
    %c0_3 = arith.constant 0 : index
    %c0_4 = arith.constant 0 : index
    %4 = vector.load %arg3[%c0_3, %c0_4] : memref<1x512xf32, #tpu.memory_space<vmem>>, vector<1x512xf32>
    %5 = vector.broadcast %4 : vector<1x512xf32> to vector<256x512xf32>
    %6 = arith.addf %3, %5 : vector<256x512xf32>
    %cst_5 = arith.constant 0.000000e+00 : f32
    %7 = vector.broadcast %cst_5 : f32 to vector<256x512xf32>
    %8 = arith.maximumf %6, %7 : vector<256x512xf32>
    %9 = arith.truncf %8 : vector<256x512xf32> to vector<256x512xbf16>
    %c0_6 = arith.constant 0 : index
    %c0_7 = arith.constant 0 : index
    %10 = vector.load %arg4[%c0_6, %c0_7] : memref<512x128xbf16, #tpu.memory_space<vmem>>, vector<512x128xbf16>
    %cst_8 = arith.constant dense<0.000000e+00> : vector<256x128xf32>
    %11 = tpu.matmul %9, %10, %cst_8 {dimension_numbers = #tpu.dot_dimension_numbers<[1], [0], [0], [1], [0, 0, 1, 1], [], []>} : vector<256x512xbf16>, vector<512x128xbf16>, vector<256x128xf32> -> vector<256x128xf32>
    %c0_9 = arith.constant 0 : index
    %c0_10 = arith.constant 0 : index
    %12 = vector.load %arg5[%c0_9, %c0_10] : memref<1x128xf32, #tpu.memory_space<vmem>>, vector<1x128xf32>
    %13 = vector.broadcast %12 : vector<1x128xf32> to vector<256x128xf32>
    %14 = arith.addf %11, %13 : vector<256x128xf32>
    %c0_11 = arith.constant 0 : index
    %c0_12 = arith.constant 0 : index
    %15 = vector.load %arg6[%c0_11, %c0_12] : memref<256x128xf32, #tpu.memory_space<vmem>>, vector<256x128xf32>
    tpu.vector_store %arg6[%c0_11, %c0_12], %14 {strides = array<i32>} : memref<256x128xf32, #tpu.memory_space<vmem>>, vector<256x128xf32>,
    return
  }
  func.func @transform_0(%arg0: i32) -> (i32, i32) {
    %c0_i32 = arith.constant 0 : i32
    %c0_i32_0 = arith.constant 0 : i32
    return %arg0, %c0_i32 : i32, i32
  }
  func.func @transform_1(%arg0: i32) -> (i32, i32) {
    %c0_i32 = arith.constant 0 : i32
    %c0_i32_0 = arith.constant 0 : i32
    %c0_i32_1 = arith.constant 0 : i32
    return %c0_i32, %c0_i32_0 : i32, i32
  }
  func.func @transform_2(%arg0: i32) -> (i32, i32) {
    %c0_i32 = arith.constant 0 : i32
    %c0_i32_0 = arith.constant 0 : i32
    %c0_i32_1 = arith.constant 0 : i32
    return %c0_i32, %c0_i32_0 : i32, i32
  }
  func.func @transform_3(%arg0: i32) -> (i32, i32) {
    %c0_i32 = arith.constant 0 : i32
    %c0_i32_0 = arith.constant 0 : i32
    %c0_i32_1 = arith.constant 0 : i32
    return %c0_i32, %c0_i32_0 : i32, i32
  }
  func.func @transform_4(%arg0: i32) -> (i32, i32) {
    %c0_i32 = arith.constant 0 : i32
    %c0_i32_0 = arith.constant 0 : i32
    %c0_i32_1 = arith.constant 0 : i32
    return %c0_i32, %c0_i32_0 : i32, i32
  }
  func.func @transform_5(%arg0: i32) -> (i32, i32) {
    %c0_i32 = arith.constant 0 : i32
    %c0_i32_0 = arith.constant 0 : i32
    return %arg0, %c0_i32 : i32, i32
  }
}

</mosaic_0001>

<bundles_post_ra>
// kernel: positionwise_ffn.1
= control target key start
LH: loop header
LB: loop body
LE: loop exit
PB: predicated region body
PF: predicated region fallthrough
CT: control target
= control target key end

     0   :  { %v1892_v2 = vmov 0   ;;  %s2434_s0 = inlined_call_operand.vmem [shape: f32[256,128], index: 0, kind: input, shape index: {}]   ;;  %s2435_s1 = inlined_call_operand.vmem [shape: bf16[128,512], index: 1, kind: input, shape index: {}]   ;;  %s2436_s2 = inlined_call_operand.vmem [shape: f32[1,512], index: 2, kind: input, shape index: {}]   ;;  %s2437_s3 = inlined_call_operand.vmem [shape: bf16[512,128], index: 3, kind: input, shape index: {}]   ;;  %s2438_s4 = inlined_call_operand.vmem [shape: f32[1,128], index: 4, kind: input, shape index: {}]   ;;  %s2439_s5 = inlined_call_operand.hbm [shape: f32[256,128], index: 5, kind: output, shape index: {}]  }
   0x1   :  { %v1788_v0 = vld [vmem:[%s2435_s1 + $0x4] ss:$16 sps:$4 sm:$0xff]   ;;  %v1790_v1 = vld [vmem:[%s2435_s1 + $0xc] ss:$16 sps:$4 sm:$0xff]   ;;  %316 = vmatprep.mubr.bf16.mxu0 %v1892_v2  ;;  %509 = vmatprep.mubr.bf16.mxu1 %v1892_v2  ;;  %v1792_v3 = vld [vmem:[%s2435_s1] ss:$16 sps:$4 sm:$0xff]  }
   0x2   :  { %284 = vmatprep.subr.bf16.mxu0 %v1788_v0  ;;  %v1793_v4 = vld [vmem:[%s2435_s1 + $0x8] ss:$16 sps:$4 sm:$0xff]   ;;  %477 = vmatprep.subr.bf16.mxu1 %v1790_v1  ;;  %v1794_v5 = vld [vmem:[%s2435_s1 + $0x24] ss:$16 sps:$4 sm:$0xff]   ;;  %v1796_v6 = vld [vmem:[%s2435_s1 + $0x2c] ss:$16 sps:$4 sm:$0xff]  }
   0x3   :  { %285 = vmatpush1.bf16.msra.mxu0 %v1792_v3  ;;  %478 = vmatpush1.bf16.msra.mxu1 %v1793_v4  ;;  %v1798_v7 = vld [vmem:[%s2435_s1 + $0x20] ss:$16 sps:$4 sm:$0xff]   ;;  %v1799_v8 = vld [vmem:[%s2435_s1 + $0x28] ss:$16 sps:$4 sm:$0xff]   ;;  %v1800_v9 = vld [vmem:[%s2435_s1 + $0x44] ss:$16 sps:$4 sm:$0xff]  }
   0x4   :  { %286 = vmatprep.subr.bf16.mxu0 %v1794_v5  ;;  %479 = vmatprep.subr.bf16.mxu1 %v1796_v6  ;;  %v1802_v10 = vld [vmem:[%s2435_s1 + $0x4c] ss:$16 sps:$4 sm:$0xff]   ;;  %v1804_v11 = vld [vmem:[%s2435_s1 + $0x40] ss:$16 sps:$4 sm:$0xff]   ;;  %v1805_v12 = vld [vmem:[%s2435_s1 + $0x48] ss:$16 sps:$4 sm:$0xff]  }
   0x5   :  { %v1806_v13 = vld [vmem:[%s2435_s1 + $0x64] ss:$16 sps:$4 sm:$0xff]   ;;  %v1808_v14 = vld [vmem:[%s2435_s1 + $0x6c] ss:$16 sps:$4 sm:$0xff]   ;;  %v1810_v15 = vld [vmem:[%s2435_s1 + $0x60] ss:$16 sps:$4 sm:$0xff]  }
   0x6   :  { %v1811_v16 = vld [vmem:[%s2435_s1 + $0x68] ss:$16 sps:$4 sm:$0xff]   ;;  %v1812_v17 = vld [vmem:[%s2435_s1 + $0x84] ss:$16 sps:$4 sm:$0xff]   ;;  %v1814_v18 = vld [vmem:[%s2435_s1 + $0x8c] ss:$16 sps:$4 sm:$0xff]  }
   0x7   :  { %287 = vmatpush1.bf16.msra.mxu0 %v1798_v7  ;;  %480 = vmatpush1.bf16.msra.mxu1 %v1799_v8  ;;  %v1816_v19 = vld [vmem:[%s2435_s1 + $0x80] ss:$16 sps:$4 sm:$0xff]   ;;  %v1817_v20 = vld [vmem:[%s2435_s1 + $0x88] ss:$16 sps:$4 sm:$0xff]   ;;  %v1818_v21 = vld [vmem:[%s2435_s1 + $0xa4] ss:$16 sps:$4 sm:$0xff]  }
   0x8   :  { %288 = vmatprep.subr.bf16.mxu0 %v1800_v9  ;;  %481 = vmatprep.subr.bf16.mxu1 %v1802_v10  ;;  %v1820_v22 = vld [vmem:[%s2435_s1 + $0xac] ss:$16 sps:$4 sm:$0xff]   ;;  %v1822_v23 = vld [vmem:[%s2435_s1 + $0xa0] ss:$16 sps:$4 sm:$0xff]   ;;  %v1823_v24 = vld [vmem:[%s2435_s1 + $0xa8] ss:$16 sps:$4 sm:$0xff]  }
   0x9   :  { %v1824_v25 = vld [vmem:[%s2435_s1 + $0xc4] ss:$16 sps:$4 sm:$0xff]   ;;  %v1826_v26 = vld [vmem:[%s2435_s1 + $0xcc] ss:$16 sps:$4 sm:$0xff]   ;;  %v1828_v27 = vld [vmem:[%s2435_s1 + $0xc0] ss:$16 sps:$4 sm:$0xff]  }
   0xa   :  { %v1829_v28 = vld [vmem:[%s2435_s1 + $0xc8] ss:$16 sps:$4 sm:$0xff]   ;;  %v1830_v29 = vld [vmem:[%s2435_s1 + $0xe4] ss:$16 sps:$4 sm:$0xff]   ;;  %v1832_v30 = vld [vmem:[%s2435_s1 + $0xec] ss:$16 sps:$4 sm:$0xff]  }
   0xb   :  { %289 = vmatpush1.bf16.msra.mxu0 %v1804_v11  ;;  %482 = vmatpush1.bf16.msra.mxu1 %v1805_v12  ;;  %v1834_v31 = vld [vmem:[%s2435_s1 + $0xe0] ss:$16 sps:$4 sm:$0xff]   ;;  %v1835_v32 = vld [vmem:[%s2435_s1 + $0xe8] ss:$16 sps:$4 sm:$0xff]  }
   0xc   :  { %290 = vmatprep.subr.bf16.mxu0 %v1806_v13  ;;  %483 = vmatprep.subr.bf16.mxu1 %v1808_v14  ;;  %v22_v33 = vld [vmem:[%s2434_s0] sm:$0xff]  ;;  %v23_v34 = vld [vmem:[%s2434_s0 + $0x8] sm:$0xff]  ;;  %v24_v40 = vld [vmem:[%s2434_s0 + $0x10] sm:$0xff] }
   0xd   :  { %v1836_v35 = vld [vmem:[%s2437_s3 + $0x40] sm:$0xff]   ;;  %v54_v36 = vpack.c.bf16 %v23_v34, %v22_v33  ;;  %v1840_v41 = vld [vmem:[%s2437_s3 + $0x48] sm:$0xff]   ;;  %v25_v42 = vld [vmem:[%s2434_s0 + $0x18] sm:$0xff] }
   0xe   :  { %v1837_v37 = vld [vmem:[%s2437_s3] sm:$0xff]   ;;  %v1841_v43 = vld [vmem:[%s2437_s3 + $0x8] sm:$0xff]   ;;  %v55_v45 = vpack.c.bf16 %v25_v42, %v24_v40  ;;  %v1844_v47 = vld [vmem:[%s2437_s3 + $0x50] sm:$0xff]  }
   0xf   :  { %291 = vmatpush1.bf16.msra.mxu0 %v1810_v15  ;;  %484 = vmatpush1.bf16.msra.mxu1 %v1811_v16  ;;  %v1838_v38 = vld [vmem:[%s2437_s3 + $0xc0] sm:$0xff]   ;;  %v1842_v44 = vld [vmem:[%s2437_s3 + $0xc8] sm:$0xff]   ;;  %v1845_v48 = vld [vmem:[%s2437_s3 + $0x10] sm:$0xff]  }
  0x10   :  { %292 = vmatprep.subr.bf16.mxu0 %v1812_v17  ;;  %485 = vmatprep.subr.bf16.mxu1 %v1814_v18  ;;  %v1839_v39 = vld [vmem:[%s2437_s3 + $0x80] sm:$0xff]   ;;  %v1843_v46 = vld [vmem:[%s2437_s3 + $0x88] sm:$0xff]   ;;  %v1846_v51 = vld [vmem:[%s2437_s3 + $0xd0] sm:$0xff]  }
  0x11   :  { %v26_v49 = vld [vmem:[%s2434_s0 + $0x20] sm:$0xff]  ;;  %v27_v50 = vld [vmem:[%s2434_s0 + $0x28] sm:$0xff]  ;;  %v1847_v52 = vld [vmem:[%s2437_s3 + $0x90] sm:$0xff]  }
  0x12   :  { %v1848_v53 = vld [vmem:[%s2437_s3 + $0x58] sm:$0xff]   ;;  %v56_v56 = vpack.c.bf16 %v27_v50, %v26_v49  ;;  %v1852_v58 = vld [vmem:[%s2437_s3 + $0x60] sm:$0xff]   ;;  %v28_v60 = vld [vmem:[%s2434_s0 + $0x30] sm:$0xff] }
  0x13   :  { %293 = vmatpush1.bf16.msra.mxu0 %v1816_v19  ;;  %486 = vmatpush1.bf16.msra.mxu1 %v1817_v20  ;;  %v1849_v54 = vld [vmem:[%s2437_s3 + $0x18] sm:$0xff]   ;;  %v1853_v59 = vld [vmem:[%s2437_s3 + $0x20] sm:$0xff]   ;;  %v1856_v0 = vld [vmem:[%s2437_s3 + $0x68] sm:$0xff]  }
  0x14   :  { %294 = vmatprep.subr.bf16.mxu0 %v1818_v21  ;;  %487 = vmatprep.subr.bf16.mxu1 %v1820_v22  ;;  %v1850_v55 = vld [vmem:[%s2437_s3 + $0xd8] sm:$0xff]   ;;  %v1854_v62 = vld [vmem:[%s2437_s3 + $0xe0] sm:$0xff]   ;;  %v1857_v1 = vld [vmem:[%s2437_s3 + $0x28] sm:$0xff]  }
  0x15   :  { %v1851_v57 = vld [vmem:[%s2437_s3 + $0x98] sm:$0xff]   ;;  %v1855_v63 = vld [vmem:[%s2437_s3 + $0xa0] sm:$0xff]   ;;  %v1858_v3 = vld [vmem:[%s2437_s3 + $0xe8] sm:$0xff]  }
  0x16   :  { %v29_v61 = vld [vmem:[%s2434_s0 + $0x38] sm:$0xff]  ;;  %v1859_v5 = vld [vmem:[%s2437_s3 + $0xa8] sm:$0xff]   ;;  %v1860_v6 = vld [vmem:[%s2437_s3 + $0x70] sm:$0xff]  }
  0x17   :  { %295 = vmatpush1.bf16.msra.mxu0 %v1822_v23  ;;  %488 = vmatpush1.bf16.msra.mxu1 %v1823_v24  ;;  %v57_v4 = vpack.c.bf16 %v29_v61, %v28_v60  ;;  %v1861_v7 = vld [vmem:[%s2437_s3 + $0x30] sm:$0xff]   ;;  %v30_v8 = vld [vmem:[%s2434_s0 + $0x40] sm:$0xff]  ;;  %v31_v9 = vld [vmem:[%s2434_s0 + $0x48] sm:$0xff] }
  0x18   :  { %296 = vmatprep.subr.bf16.mxu0 %v1824_v25  ;;  %489 = vmatprep.subr.bf16.mxu1 %v1826_v26  ;;  %v1862_v10 = vld [vmem:[%s2437_s3 + $0xf0] sm:$0xff]   ;;  %v1864_v12 = vld [vmem:[%s2437_s3 + $0x78] sm:$0xff]   ;;  %v58_v15 = vpack.c.bf16 %v31_v9, %v30_v8 }
  0x19   :  { %v1863_v11 = vld [vmem:[%s2437_s3 + $0xb0] sm:$0xff]   ;;  %v1865_v13 = vld [vmem:[%s2437_s3 + $0x38] sm:$0xff]  }
  0x1a   :  { %v1866_v14 = vld [vmem:[%s2437_s3 + $0xf8] sm:$0xff]  }
  0x1b   :  { %297 = vmatpush1.bf16.msra.mxu0 %v1828_v27  ;;  %490 = vmatpush1.bf16.msra.mxu1 %v1829_v28  ;;  %v1867_v16 = vld [vmem:[%s2437_s3 + $0xb8] sm:$0xff]  }
  0x1c   :  { %298 = vmatprep.subr.bf16.mxu0 %v1830_v29  ;;  %491 = vmatprep.subr.bf16.mxu1 %v1832_v30 }
  0x1f   :  { %299 = vmatpush1.bf16.msra.mxu0 %v1834_v31  ;;  %492 = vmatpush1.bf16.msra.mxu1 %v1835_v32 }
  0x20   :  { %1560 = vmatprep.subr.bf16.mxu0 %v1836_v35  ;;  %1672 = vmatprep.subr.bf16.mxu1 %v1838_v38 }
  0x22   :  { %317 = vmatmul.mubr.bf16.vlgmr.msra.gmra.mrb[0].mxu0 %v54_v36  ;;  %510 = vmatmul.mubr.bf16.vlgmr.msra.gmra.mrb[0].mxu1 %v54_v36 }
  0x23   :  { %326 = vmatprep.mubr.bf16.mxu0 %v1892_v2  ;;  %519 = vmatprep.mubr.bf16.mxu1 %v1892_v2 }
  0x24   :  { %1561 = vmatpush3.bf16.msra.mxu0 %v1837_v37  ;;  %1673 = vmatpush3.bf16.msra.mxu1 %v1839_v39 }
  0x25   :  { %1562 = vmatprep.subr.bf16.mxu0 %v1840_v41  ;;  %1674 = vmatprep.subr.bf16.mxu1 %v1842_v44 }
  0x28   :  { %1563 = vmatpush3.bf16.msra.mxu0 %v1841_v43  ;;  %1675 = vmatpush3.bf16.msra.mxu1 %v1843_v46 }
  0x29   :  { %1564 = vmatprep.subr.bf16.mxu0 %v1844_v47  ;;  %1676 = vmatprep.subr.bf16.mxu1 %v1846_v51 }
  0x2a   :  { %327 = vmatmul.mubr.bf16.gmra.mrb[4].mxu0 %v55_v45  ;;  %520 = vmatmul.mubr.bf16.gmra.mrb[4].mxu1 %v55_v45 }
  0x2b   :  { %336 = vmatprep.mubr.bf16.mxu0 %v1892_v2  ;;  %529 = vmatprep.mubr.bf16.mxu1 %v1892_v2 }
  0x2c   :  { %1565 = vmatpush3.bf16.msra.mxu0 %v1845_v48  ;;  %1677 = vmatpush3.bf16.msra.mxu1 %v1847_v52 }
  0x2d   :  { %1566 = vmatprep.subr.bf16.mxu0 %v1848_v53  ;;  %1678 = vmatprep.subr.bf16.mxu1 %v1850_v55 }
  0x30   :  { %1567 = vmatpush3.bf16.msra.mxu0 %v1849_v54  ;;  %1679 = vmatpush3.bf16.msra.mxu1 %v1851_v57 }
  0x31   :  { %1568 = vmatprep.subr.bf16.mxu0 %v1852_v58  ;;  %1680 = vmatprep.subr.bf16.mxu1 %v1854_v62 }
  0x32   :  { %337 = vmatmul.mubr.bf16.gmra.mrb[8].mxu0 %v56_v56  ;;  %530 = vmatmul.mubr.bf16.gmra.mrb[8].mxu1 %v56_v56 }
  0x33   :  { %346 = vmatprep.mubr.bf16.mxu0 %v1892_v2  ;;  %539 = vmatprep.mubr.bf16.mxu1 %v1892_v2 }
  0x34   :  { %1569 = vmatpush3.bf16.msra.mxu0 %v1853_v59  ;;  %1681 = vmatpush3.bf16.msra.mxu1 %v1855_v63 }
  0x35   :  { %1570 = vmatprep.subr.bf16.mxu0 %v1856_v0  ;;  %1682 = vmatprep.subr.bf16.mxu1 %v1858_v3 }
  0x38   :  { %1571 = vmatpush3.bf16.msra.mxu0 %v1857_v1  ;;  %1683 = vmatpush3.bf16.msra.mxu1 %v1859_v5 }
  0x39   :  { %1572 = vmatprep.subr.bf16.mxu0 %v1860_v6  ;;  %1684 = vmatprep.subr.bf16.mxu1 %v1862_v10 }
  0x3a   :  { %347 = vmatmul.mubr.bf16.gmra.mrb[12].mxu0 %v57_v4  ;;  %540 = vmatmul.mubr.bf16.gmra.mrb[12].mxu1 %v57_v4 }
  0x3b   :  { %356 = vmatprep.mubr.bf16.mxu0 %v1892_v2  ;;  %549 = vmatprep.mubr.bf16.mxu1 %v1892_v2 }
  0x3c   :  { %1573 = vmatpush3.bf16.msra.mxu0 %v1861_v7  ;;  %1685 = vmatpush3.bf16.msra.mxu1 %v1863_v11 }
  0x3d   :  { %1574 = vmatprep.subr.bf16.mxu0 %v1864_v12  ;;  %1686 = vmatprep.subr.bf16.mxu1 %v1866_v14 }
  0x3e   :  { %10 = vsyncpa [#allocation3], 0  ;;  %v32_v17 = vld [vmem:[%s2434_s0 + $0x50] sm:$0xff]  ;;  %v33_v18 = vld [vmem:[%s2434_s0 + $0x58] sm:$0xff]  ;;  %v104_v50 = vlaneseq }
  0x3f   :  { %v59_v19 = vpack.c.bf16 %v33_v18, %v32_v17  ;;  %v34_v20 = vld [vmem:[%s2434_s0 + $0x60] sm:$0xff]  ;;  %v35_v21 = vld [vmem:[%s2434_s0 + $0x68] sm:$0xff]  ;;  %v36_v23 = vld [vmem:[%s2434_s0 + $0x70] sm:$0xff] }
  0x40   :  { %1575 = vmatpush3.bf16.msra.mxu0 %v1865_v13  ;;  %1687 = vmatpush3.bf16.msra.mxu1 %v1867_v16  ;;  %v60_v22 = vpack.c.bf16 %v35_v21, %v34_v20  ;;  %v37_v24 = vld [vmem:[%s2434_s0 + $0x78] sm:$0xff]  ;;  %v38_v26 = vld [vmem:[%s2434_s0 + $0x80] sm:$0xff]  ;;  %v39_v27 = vld [vmem:[%s2434_s0 + $0x88] sm:$0xff]  ;;  %v105_v51 = vshrl.u32 %v104_v50, 7 }
  0x41   :  { %v61_v25 = vpack.c.bf16 %v37_v24, %v36_v23  ;;  %v62_v28 = vpack.c.bf16 %v39_v27, %v38_v26  ;;  %v40_v29 = vld [vmem:[%s2434_s0 + $0x90] sm:$0xff]  ;;  %v41_v30 = vld [vmem:[%s2434_s0 + $0x98] sm:$0xff]  ;;  %v42_v32 = vld [vmem:[%s2434_s0 + $0xa0] sm:$0xff] }
  0x42   :  { %357 = vmatmul.mubr.bf16.gmra.mrb[16].mxu0 %v58_v15  ;;  %550 = vmatmul.mubr.bf16.gmra.mrb[16].mxu1 %v58_v15  ;;  %v63_v31 = vpack.c.bf16 %v41_v30, %v40_v29  ;;  %v43_v33 = vld [vmem:[%s2434_s0 + $0xa8] sm:$0xff]  ;;  %v44_v35 = vld [vmem:[%s2434_s0 + $0xb0] sm:$0xff]  ;;  %v45_v36 = vld [vmem:[%s2434_s0 + $0xb8] sm:$0xff]  ;;  %v106_v52 = vsub.s32 0, %v105_v51  ;;  %v114_v53 = vsub.s32 2, %v105_v51  ;;  %v118_v55 = vsub.s32 3, %v105_v51 }
  0x43   :  { %366 = vmatprep.mubr.bf16.mxu0 %v1892_v2  ;;  %559 = vmatprep.mubr.bf16.mxu1 %v1892_v2  ;;  %v64_v34 = vpack.c.bf16 %v43_v33, %v42_v32  ;;  %v65_v37 = vpack.c.bf16 %v45_v36, %v44_v35  ;;  %v46_v38 = vld [vmem:[%s2434_s0 + $0xc0] sm:$0xff]  ;;  %v47_v39 = vld [vmem:[%s2434_s0 + $0xc8] sm:$0xff]  ;;  %v48_v41 = vld [vmem:[%s2434_s0 + $0xd0] sm:$0xff] }
  0x44   :  { %v66_v40 = vpack.c.bf16 %v47_v39, %v46_v38  ;;  %v49_v42 = vld [vmem:[%s2434_s0 + $0xd8] sm:$0xff]  ;;  %v50_v44 = vld [vmem:[%s2434_s0 + $0xe0] sm:$0xff]  ;;  %v51_v45 = vld [vmem:[%s2434_s0 + $0xe8] sm:$0xff] }
  0x45   :  { %v67_v43 = vpack.c.bf16 %v49_v42, %v48_v41  ;;  %v68_v46 = vpack.c.bf16 %v51_v45, %v50_v44  ;;  %v52_v47 = vld [vmem:[%s2434_s0 + $0xf0] sm:$0xff]  ;;  %v53_v48 = vld [vmem:[%s2434_s0 + $0xf8] sm:$0xff]  ;;  %v102_v54 = vld [vmem:[%s2436_s2] sm:$0xf] }
  0x46   :  { %v69_v49 = vpack.c.bf16 %v53_v48, %v52_v47  ;;  %v2249_v56 = vrot.slane %v102_v54, %v106_v52  ;;  %v2251_v57 = vrot.slane %v102_v54, %v114_v53  ;;  %v2255_v59 = vrot.slane %v102_v54, %v118_v55 }
  0x4a   :  { %367 = vmatmul.mubr.bf16.gmra.mrb[20].mxu0 %v59_v19  ;;  %560 = vmatmul.mubr.bf16.gmra.mrb[20].mxu1 %v59_v19 }
  0x4b   :  { %376 = vmatprep.mubr.bf16.mxu0 %v1892_v2  ;;  %569 = vmatprep.mubr.bf16.mxu1 %v1892_v2 }
  0x52   :  { %377 = vmatmul.mubr.bf16.gmra.mrb[24].mxu0 %v60_v22  ;;  %570 = vmatmul.mubr.bf16.gmra.mrb[24].mxu1 %v60_v22 }
  0x53   :  { %386 = vmatprep.mubr.bf16.mxu0 %v1892_v2  ;;  %579 = vmatprep.mubr.bf16.mxu1 %v1892_v2 }
  0x5a   :  { %387 = vmatmul.mubr.bf16.gmra.mrb[28].mxu0 %v61_v25  ;;  %580 = vmatmul.mubr.bf16.gmra.mrb[28].mxu1 %v61_v25 }
  0x5b   :  { %396 = vmatprep.mubr.bf16.mxu0 %v1892_v2  ;;  %589 = vmatprep.mubr.bf16.mxu1 %v1892_v2 }
  0x62   :  { %397 = vmatmul.mubr.bf16.gmra.mrb[32].mxu0 %v62_v28  ;;  %590 = vmatmul.mubr.bf16.gmra.mrb[32].mxu1 %v62_v28 }
  0x63   :  { %406 = vmatprep.mubr.bf16.mxu0 %v1892_v2  ;;  %599 = vmatprep.mubr.bf16.mxu1 %v1892_v2 }
  0x6a   :  { %407 = vmatmul.mubr.bf16.gmra.mrb[36].mxu0 %v63_v31  ;;  %600 = vmatmul.mubr.bf16.gmra.mrb[36].mxu1 %v63_v31 }
  0x6b   :  { %416 = vmatprep.mubr.bf16.mxu0 %v1892_v2  ;;  %609 = vmatprep.mubr.bf16.mxu1 %v1892_v2 }
  0x72   :  { %417 = vmatmul.mubr.bf16.gmra.mrb[40].mxu0 %v64_v34  ;;  %610 = vmatmul.mubr.bf16.gmra.mrb[40].mxu1 %v64_v34 }
  0x73   :  { %426 = vmatprep.mubr.bf16.mxu0 %v1892_v2  ;;  %619 = vmatprep.mubr.bf16.mxu1 %v1892_v2 }
  0x7a   :  { %427 = vmatmul.mubr.bf16.gmra.mrb[44].mxu0 %v65_v37  ;;  %620 = vmatmul.mubr.bf16.gmra.mrb[44].mxu1 %v65_v37 }
  0x7b   :  { %436 = vmatprep.mubr.bf16.mxu0 %v1892_v2  ;;  %629 = vmatprep.mubr.bf16.mxu1 %v1892_v2 }
  0x82   :  { %437 = vmatmul.mubr.bf16.gmra.mrb[48].mxu0 %v66_v40  ;;  %630 = vmatmul.mubr.bf16.gmra.mrb[48].mxu1 %v66_v40 }
  0x83   :  { %446 = vmatprep.mubr.bf16.mxu0 %v1892_v2  ;;  %639 = vmatprep.mubr.bf16.mxu1 %v1892_v2 }
  0x8a   :  { %447 = vmatmul.mubr.bf16.gmra.mrb[52].mxu0 %v67_v43  ;;  %640 = vmatmul.mubr.bf16.gmra.mrb[52].mxu1 %v67_v43 }
  0x8b   :  { %456 = vmatprep.mubr.bf16.mxu0 %v1892_v2  ;;  %649 = vmatprep.mubr.bf16.mxu1 %v1892_v2 }
  0x92   :  { %457 = vmatmul.mubr.bf16.gmra.mrb[56].mxu0 %v68_v46  ;;  %650 = vmatmul.mubr.bf16.gmra.mrb[56].mxu1 %v68_v46 }
  0x93   :  { %466 = vmatprep.mubr.bf16.mxu0 %v1892_v2  ;;  %659 = vmatprep.mubr.bf16.mxu1 %v1892_v2  ;;  %v110_v2 = vsub.s32 1, %v105_v51 }
  0x95   :  { %v2253_v58 = vrot.slane %v102_v54, %v110_v2 }
  0x9a   :  { %467 = vmatmul.mubr.bf16.gmra.mrb[60].mxu0 %v69_v49  ;;  %660 = vmatmul.mubr.bf16.gmra.mrb[60].mxu1 %v69_v49 }
  0xf5   :  { %v318_v60 = vpop.f32.mrb[0].mxu0  ;;  %v511_v61 = vpop.f32.mrb[0].mxu1 }
  0xf6   :  { %v319_v62 = vadd.f32 %v318_v60, %v2249_v56  ;;  %v512_v63 = vadd.f32 %v511_v61, %v2251_v57  ;;  %v320_v0 = vpop.f32.mrb[1].mxu0  ;;  %v513_v1 = vpop.f32.mrb[1].mxu1 }
  0xf7   :  { %v321_v3 = vadd.f32 %v320_v0, %v2253_v58  ;;  %v514_v4 = vadd.f32 %v513_v1, %v2255_v59  ;;  %v322_v5 = vpop.f32.mrb[2].mxu0  ;;  %v515_v6 = vpop.f32.mrb[2].mxu1 }
  0xf8   :  { %v672_v7 = vmax.f32 %v512_v63, 0.0  ;;  %v323_v8 = vadd.f32 %v322_v5, %v2249_v56  ;;  %v516_v9 = vadd.f32 %v515_v6, %v2251_v57  ;;  %v324_v10 = vpop.f32.mrb[3].mxu0  ;;  %v517_v11 = vpop.f32.mrb[3].mxu1  ;;  %v670_v15 = vmax.f32 %v319_v62, 0.0 }
  0xf9   :  { %v673_v12 = vmax.f32 %v514_v4, 0.0  ;;  %v325_v13 = vadd.f32 %v324_v10, %v2253_v58  ;;  %v518_v14 = vadd.f32 %v517_v11, %v2255_v59  ;;  %v671_v18 = vmax.f32 %v321_v3, 0.0 }
  0xfa   :  { %v674_v16 = vmax.f32 %v323_v8, 0.0  ;;  %v676_v17 = vmax.f32 %v516_v9, 0.0 }
  0xfb   :  { %v675_v19 = vmax.f32 %v325_v13, 0.0  ;;  %v677_v20 = vmax.f32 %v518_v14, 0.0 }
  0xfc   :  { %v798_v21 = vpack.c.bf16 %v674_v16, %v670_v15  ;;  %v800_v22 = vpack.c.bf16 %v676_v17, %v672_v7 }
  0xfd   :  { %v799_v23 = vpack.c.bf16 %v675_v19, %v671_v18  ;;  %v801_v24 = vpack.c.bf16 %v677_v20, %v673_v12  ;;  %v328_v25 = vpop.f32.mrb[4].mxu0  ;;  %v521_v26 = vpop.f32.mrb[4].mxu1 }
  0xfe   :  { %v329_v27 = vadd.f32 %v328_v25, %v2249_v56  ;;  %v522_v28 = vadd.f32 %v521_v26, %v2251_v57  ;;  %v330_v29 = vpop.f32.mrb[5].mxu0  ;;  %v523_v30 = vpop.f32.mrb[5].mxu1 }
  0xff   :  { %v331_v31 = vadd.f32 %v330_v29, %v2253_v58  ;;  %v524_v32 = vadd.f32 %v523_v30, %v2255_v59  ;;  %v332_v33 = vpop.f32.mrb[6].mxu0  ;;  %v525_v34 = vpop.f32.mrb[6].mxu1  ;;  %1157 = vmatprep.mubr.bf16.mxu0 %v799_v23  ;;  %1318 = vmatprep.mubr.bf16.mxu1 %v801_v24 }
 0x100   :  { %v680_v35 = vmax.f32 %v522_v28, 0.0  ;;  %v333_v36 = vadd.f32 %v332_v33, %v2249_v56  ;;  %v526_v37 = vadd.f32 %v525_v34, %v2251_v57  ;;  %v334_v38 = vpop.f32.mrb[7].mxu0  ;;  %v527_v39 = vpop.f32.mrb[7].mxu1  ;;  %1158 = vmatmul.mubr.bf16.vlgmr.msra.gmra.mrb[64].mxu0 %v798_v21  ;;  %1319 = vmatmul.mubr.bf16.vlgmr.msra.gmra.mrb[64].mxu1 %v800_v22  ;;  %v678_v43 = vmax.f32 %v329_v27, 0.0 }
 0x101   :  { %v681_v40 = vmax.f32 %v524_v32, 0.0  ;;  %v335_v41 = vadd.f32 %v334_v38, %v2253_v58  ;;  %v528_v42 = vadd.f32 %v527_v39, %v2255_v59  ;;  %v679_v46 = vmax.f32 %v331_v31, 0.0 }
 0x102   :  { %v682_v44 = vmax.f32 %v333_v36, 0.0  ;;  %v684_v45 = vmax.f32 %v526_v37, 0.0 }
 0x103   :  { %v683_v47 = vmax.f32 %v335_v41, 0.0  ;;  %v685_v48 = vmax.f32 %v528_v42, 0.0 }
 0x104   :  { %v802_v49 = vpack.c.bf16 %v682_v44, %v678_v43  ;;  %v804_v50 = vpack.c.bf16 %v684_v45, %v680_v35 }
 0x105   :  { %v803_v51 = vpack.c.bf16 %v683_v47, %v679_v46  ;;  %v805_v52 = vpack.c.bf16 %v685_v48, %v681_v40  ;;  %v338_v53 = vpop.f32.mrb[8].mxu0  ;;  %v531_v54 = vpop.f32.mrb[8].mxu1 }
 0x106   :  { %v339_v2 = vadd.f32 %v338_v53, %v2249_v56  ;;  %v532_v55 = vadd.f32 %v531_v54, %v2251_v57  ;;  %v340_v60 = vpop.f32.mrb[9].mxu0  ;;  %v533_v61 = vpop.f32.mrb[9].mxu1 }
 0x107   :  { %v341_v62 = vadd.f32 %v340_v60, %v2253_v58  ;;  %v534_v63 = vadd.f32 %v533_v61, %v2255_v59  ;;  %v342_v0 = vpop.f32.mrb[10].mxu0  ;;  %v535_v1 = vpop.f32.mrb[10].mxu1  ;;  %1165 = vmatprep.mubr.bf16.mxu0 %v803_v51  ;;  %1326 = vmatprep.mubr.bf16.mxu1 %v805_v52 }
 0x108   :  { %v688_v3 = vmax.f32 %v532_v55, 0.0  ;;  %v343_v4 = vadd.f32 %v342_v0, %v2249_v56  ;;  %v536_v5 = vadd.f32 %v535_v1, %v2251_v57  ;;  %v344_v6 = vpop.f32.mrb[11].mxu0  ;;  %v537_v7 = vpop.f32.mrb[11].mxu1  ;;  %1166 = vmatmul.mubr.bf16.gmra.mrb[68].mxu0 %v802_v49  ;;  %1327 = vmatmul.mubr.bf16.gmra.mrb[68].mxu1 %v804_v50  ;;  %v686_v11 = vmax.f32 %v339_v2, 0.0 }
 0x109   :  { %v689_v8 = vmax.f32 %v534_v63, 0.0  ;;  %v345_v9 = vadd.f32 %v344_v6, %v2253_v58  ;;  %v538_v10 = vadd.f32 %v537_v7, %v2255_v59  ;;  %v687_v14 = vmax.f32 %v341_v62, 0.0 }
 0x10a   :  { %v690_v12 = vmax.f32 %v343_v4, 0.0  ;;  %v692_v13 = vmax.f32 %v536_v5, 0.0 }
 0x10b   :  { %v691_v15 = vmax.f32 %v345_v9, 0.0  ;;  %v693_v16 = vmax.f32 %v538_v10, 0.0 }
 0x10c   :  { %v806_v17 = vpack.c.bf16 %v690_v12, %v686_v11  ;;  %v808_v18 = vpack.c.bf16 %v692_v13, %v688_v3 }
 0x10d   :  { %v807_v19 = vpack.c.bf16 %v691_v15, %v687_v14  ;;  %v809_v20 = vpack.c.bf16 %v693_v16, %v689_v8  ;;  %v348_v21 = vpop.f32.mrb[12].mxu0  ;;  %v541_v22 = vpop.f32.mrb[12].mxu1 }
 0x10e   :  { %v349_v23 = vadd.f32 %v348_v21, %v2249_v56  ;;  %v542_v24 = vadd.f32 %v541_v22, %v2251_v57  ;;  %v350_v25 = vpop.f32.mrb[13].mxu0  ;;  %v543_v26 = vpop.f32.mrb[13].mxu1 }
 0x10f   :  { %v351_v27 = vadd.f32 %v350_v25, %v2253_v58  ;;  %v544_v28 = vadd.f32 %v543_v26, %v2255_v59  ;;  %v352_v29 = vpop.f32.mrb[14].mxu0  ;;  %v545_v30 = vpop.f32.mrb[14].mxu1  ;;  %1173 = vmatprep.mubr.bf16.mxu0 %v807_v19  ;;  %1334 = vmatprep.mubr.bf16.mxu1 %v809_v20 }
 0x110   :  { %v696_v31 = vmax.f32 %v542_v24, 0.0  ;;  %v353_v32 = vadd.f32 %v352_v29, %v2249_v56  ;;  %v546_v33 = vadd.f32 %v545_v30, %v2251_v57  ;;  %v354_v34 = vpop.f32.mrb[15].mxu0  ;;  %v547_v35 = vpop.f32.mrb[15].mxu1  ;;  %1174 = vmatmul.mubr.bf16.gmra.mrb[72].mxu0 %v806_v17  ;;  %1335 = vmatmul.mubr.bf16.gmra.mrb[72].mxu1 %v808_v18  ;;  %v694_v39 = vmax.f32 %v349_v23, 0.0 }
 0x111   :  { %v697_v36 = vmax.f32 %v544_v28, 0.0  ;;  %v355_v37 = vadd.f32 %v354_v34, %v2253_v58  ;;  %v548_v38 = vadd.f32 %v547_v35, %v2255_v59  ;;  %v695_v42 = vmax.f32 %v351_v27, 0.0 }
 0x112   :  { %v698_v40 = vmax.f32 %v353_v32, 0.0  ;;  %v700_v41 = vmax.f32 %v546_v33, 0.0 }
 0x113   :  { %v699_v43 = vmax.f32 %v355_v37, 0.0  ;;  %v701_v44 = vmax.f32 %v548_v38, 0.0 }
 0x114   :  { %v810_v45 = vpack.c.bf16 %v698_v40, %v694_v39  ;;  %v812_v46 = vpack.c.bf16 %v700_v41, %v696_v31 }
 0x115   :  { %v811_v47 = vpack.c.bf16 %v699_v43, %v695_v42  ;;  %v813_v48 = vpack.c.bf16 %v701_v44, %v697_v36  ;;  %v358_v49 = vpop.f32.mrb[16].mxu0  ;;  %v551_v50 = vpop.f32.mrb[16].mxu1 }
 0x116   :  { %v359_v51 = vadd.f32 %v358_v49, %v2249_v56  ;;  %v552_v52 = vadd.f32 %v551_v50, %v2251_v57  ;;  %v360_v53 = vpop.f32.mrb[17].mxu0  ;;  %v553_v54 = vpop.f32.mrb[17].mxu1 }
 0x117   :  { %v361_v2 = vadd.f32 %v360_v53, %v2253_v58  ;;  %v554_v55 = vadd.f32 %v553_v54, %v2255_v59  ;;  %v362_v60 = vpop.f32.mrb[18].mxu0  ;;  %v555_v61 = vpop.f32.mrb[18].mxu1  ;;  %1181 = vmatprep.mubr.bf16.mxu0 %v811_v47  ;;  %1342 = vmatprep.mubr.bf16.mxu1 %v813_v48 }
 0x118   :  { %v704_v62 = vmax.f32 %v552_v52, 0.0  ;;  %v363_v63 = vadd.f32 %v362_v60, %v2249_v56  ;;  %v556_v0 = vadd.f32 %v555_v61, %v2251_v57  ;;  %v364_v1 = vpop.f32.mrb[19].mxu0  ;;  %v557_v3 = vpop.f32.mrb[19].mxu1  ;;  %1182 = vmatmul.mubr.bf16.gmra.mrb[76].mxu0 %v810_v45  ;;  %1343 = vmatmul.mubr.bf16.gmra.mrb[76].mxu1 %v812_v46  ;;  %v702_v7 = vmax.f32 %v359_v51, 0.0 }
 0x119   :  { %v705_v4 = vmax.f32 %v554_v55, 0.0  ;;  %v365_v5 = vadd.f32 %v364_v1, %v2253_v58  ;;  %v558_v6 = vadd.f32 %v557_v3, %v2255_v59  ;;  %v703_v10 = vmax.f32 %v361_v2, 0.0 }
 0x11a   :  { %v706_v8 = vmax.f32 %v363_v63, 0.0  ;;  %v708_v9 = vmax.f32 %v556_v0, 0.0 }
 0x11b   :  { %v707_v11 = vmax.f32 %v365_v5, 0.0  ;;  %v709_v12 = vmax.f32 %v558_v6, 0.0 }
 0x11c   :  { %v814_v13 = vpack.c.bf16 %v706_v8, %v702_v7  ;;  %v816_v14 = vpack.c.bf16 %v708_v9, %v704_v62 }
 0x11d   :  { %v815_v15 = vpack.c.bf16 %v707_v11, %v703_v10  ;;  %v817_v16 = vpack.c.bf16 %v709_v12, %v705_v4  ;;  %v368_v17 = vpop.f32.mrb[20].mxu0  ;;  %v561_v18 = vpop.f32.mrb[20].mxu1 }
 0x11e   :  { %v369_v19 = vadd.f32 %v368_v17, %v2249_v56  ;;  %v562_v20 = vadd.f32 %v561_v18, %v2251_v57  ;;  %v370_v21 = vpop.f32.mrb[21].mxu0  ;;  %v563_v22 = vpop.f32.mrb[21].mxu1 }
 0x11f   :  { %v371_v23 = vadd.f32 %v370_v21, %v2253_v58  ;;  %v564_v24 = vadd.f32 %v563_v22, %v2255_v59  ;;  %v372_v25 = vpop.f32.mrb[22].mxu0  ;;  %v565_v26 = vpop.f32.mrb[22].mxu1  ;;  %1189 = vmatprep.mubr.bf16.mxu0 %v815_v15  ;;  %1350 = vmatprep.mubr.bf16.mxu1 %v817_v16 }
 0x120   :  { %v712_v27 = vmax.f32 %v562_v20, 0.0  ;;  %v373_v28 = vadd.f32 %v372_v25, %v2249_v56  ;;  %v566_v29 = vadd.f32 %v565_v26, %v2251_v57  ;;  %v374_v30 = vpop.f32.mrb[23].mxu0  ;;  %v567_v31 = vpop.f32.mrb[23].mxu1  ;;  %1190 = vmatmul.mubr.bf16.gmra.mrb[80].mxu0 %v814_v13  ;;  %1351 = vmatmul.mubr.bf16.gmra.mrb[80].mxu1 %v816_v14  ;;  %v710_v35 = vmax.f32 %v369_v19, 0.0 }
 0x121   :  { %v713_v32 = vmax.f32 %v564_v24, 0.0  ;;  %v375_v33 = vadd.f32 %v374_v30, %v2253_v58  ;;  %v568_v34 = vadd.f32 %v567_v31, %v2255_v59  ;;  %v711_v38 = vmax.f32 %v371_v23, 0.0 }
 0x122   :  { %v714_v36 = vmax.f32 %v373_v28, 0.0  ;;  %v716_v37 = vmax.f32 %v566_v29, 0.0 }
 0x123   :  { %v715_v39 = vmax.f32 %v375_v33, 0.0  ;;  %v717_v40 = vmax.f32 %v568_v34, 0.0 }
 0x124   :  { %v818_v41 = vpack.c.bf16 %v714_v36, %v710_v35  ;;  %v820_v42 = vpack.c.bf16 %v716_v37, %v712_v27 }
 0x125   :  { %v819_v43 = vpack.c.bf16 %v715_v39, %v711_v38  ;;  %v821_v44 = vpack.c.bf16 %v717_v40, %v713_v32  ;;  %v378_v45 = vpop.f32.mrb[24].mxu0  ;;  %v571_v46 = vpop.f32.mrb[24].mxu1 }
 0x126   :  { %v379_v47 = vadd.f32 %v378_v45, %v2249_v56  ;;  %v572_v48 = vadd.f32 %v571_v46, %v2251_v57  ;;  %v380_v49 = vpop.f32.mrb[25].mxu0  ;;  %v573_v50 = vpop.f32.mrb[25].mxu1 }
 0x127   :  { %v381_v51 = vadd.f32 %v380_v49, %v2253_v58  ;;  %v574_v52 = vadd.f32 %v573_v50, %v2255_v59  ;;  %v382_v53 = vpop.f32.mrb[26].mxu0  ;;  %v575_v54 = vpop.f32.mrb[26].mxu1  ;;  %1197 = vmatprep.mubr.bf16.mxu0 %v819_v43  ;;  %1358 = vmatprep.mubr.bf16.mxu1 %v821_v44 }
 0x128   :  { %v720_v2 = vmax.f32 %v572_v48, 0.0  ;;  %v383_v55 = vadd.f32 %v382_v53, %v2249_v56  ;;  %v576_v60 = vadd.f32 %v575_v54, %v2251_v57  ;;  %v384_v61 = vpop.f32.mrb[27].mxu0  ;;  %v577_v62 = vpop.f32.mrb[27].mxu1  ;;  %1198 = vmatmul.mubr.bf16.gmra.mrb[84].mxu0 %v818_v41  ;;  %1359 = vmatmul.mubr.bf16.gmra.mrb[84].mxu1 %v820_v42  ;;  %v718_v3 = vmax.f32 %v379_v47, 0.0 }
 0x129   :  { %v721_v63 = vmax.f32 %v574_v52, 0.0  ;;  %v385_v0 = vadd.f32 %v384_v61, %v2253_v58  ;;  %v578_v1 = vadd.f32 %v577_v62, %v2255_v59  ;;  %v719_v6 = vmax.f32 %v381_v51, 0.0 }
 0x12a   :  { %v722_v4 = vmax.f32 %v383_v55, 0.0  ;;  %v724_v5 = vmax.f32 %v576_v60, 0.0 }
 0x12b   :  { %v723_v7 = vmax.f32 %v385_v0, 0.0  ;;  %v725_v8 = vmax.f32 %v578_v1, 0.0 }
 0x12c   :  { %v822_v9 = vpack.c.bf16 %v722_v4, %v718_v3  ;;  %v824_v10 = vpack.c.bf16 %v724_v5, %v720_v2 }
 0x12d   :  { %v823_v11 = vpack.c.bf16 %v723_v7, %v719_v6  ;;  %v825_v12 = vpack.c.bf16 %v725_v8, %v721_v63  ;;  %v388_v13 = vpop.f32.mrb[28].mxu0  ;;  %v581_v14 = vpop.f32.mrb[28].mxu1 }
 0x12e   :  { %v389_v15 = vadd.f32 %v388_v13, %v2249_v56  ;;  %v582_v16 = vadd.f32 %v581_v14, %v2251_v57  ;;  %v390_v17 = vpop.f32.mrb[29].mxu0  ;;  %v583_v18 = vpop.f32.mrb[29].mxu1 }
 0x12f   :  { %v391_v19 = vadd.f32 %v390_v17, %v2253_v58  ;;  %v584_v20 = vadd.f32 %v583_v18, %v2255_v59  ;;  %v392_v21 = vpop.f32.mrb[30].mxu0  ;;  %v585_v22 = vpop.f32.mrb[30].mxu1  ;;  %1205 = vmatprep.mubr.bf16.mxu0 %v823_v11  ;;  %1366 = vmatprep.mubr.bf16.mxu1 %v825_v12 }
 0x130   :  { %v728_v23 = vmax.f32 %v582_v16, 0.0  ;;  %v393_v24 = vadd.f32 %v392_v21, %v2249_v56  ;;  %v586_v25 = vadd.f32 %v585_v22, %v2251_v57  ;;  %v394_v26 = vpop.f32.mrb[31].mxu0  ;;  %v587_v27 = vpop.f32.mrb[31].mxu1  ;;  %1206 = vmatmul.mubr.bf16.gmra.mrb[88].mxu0 %v822_v9  ;;  %1367 = vmatmul.mubr.bf16.gmra.mrb[88].mxu1 %v824_v10  ;;  %v726_v31 = vmax.f32 %v389_v15, 0.0 }
 0x131   :  { %v729_v28 = vmax.f32 %v584_v20, 0.0  ;;  %v395_v29 = vadd.f32 %v394_v26, %v2253_v58  ;;  %v588_v30 = vadd.f32 %v587_v27, %v2255_v59  ;;  %v727_v34 = vmax.f32 %v391_v19, 0.0 }
 0x132   :  { %v730_v32 = vmax.f32 %v393_v24, 0.0  ;;  %v732_v33 = vmax.f32 %v586_v25, 0.0 }
 0x133   :  { %v731_v35 = vmax.f32 %v395_v29, 0.0  ;;  %v733_v36 = vmax.f32 %v588_v30, 0.0 }
 0x134   :  { %v826_v37 = vpack.c.bf16 %v730_v32, %v726_v31  ;;  %v828_v38 = vpack.c.bf16 %v732_v33, %v728_v23 }
 0x135   :  { %v827_v39 = vpack.c.bf16 %v731_v35, %v727_v34  ;;  %v829_v40 = vpack.c.bf16 %v733_v36, %v729_v28  ;;  %v398_v41 = vpop.f32.mrb[32].mxu0  ;;  %v591_v42 = vpop.f32.mrb[32].mxu1 }
 0x136   :  { %v399_v43 = vadd.f32 %v398_v41, %v2249_v56  ;;  %v592_v44 = vadd.f32 %v591_v42, %v2251_v57  ;;  %v400_v45 = vpop.f32.mrb[33].mxu0  ;;  %v593_v46 = vpop.f32.mrb[33].mxu1 }
 0x137   :  { %v401_v47 = vadd.f32 %v400_v45, %v2253_v58  ;;  %v594_v48 = vadd.f32 %v593_v46, %v2255_v59  ;;  %v402_v49 = vpop.f32.mrb[34].mxu0  ;;  %v595_v50 = vpop.f32.mrb[34].mxu1  ;;  %1213 = vmatprep.mubr.bf16.mxu0 %v827_v39  ;;  %1374 = vmatprep.mubr.bf16.mxu1 %v829_v40 }
 0x138   :  { %v736_v51 = vmax.f32 %v592_v44, 0.0  ;;  %v403_v52 = vadd.f32 %v402_v49, %v2249_v56  ;;  %v596_v53 = vadd.f32 %v595_v50, %v2251_v57  ;;  %v404_v54 = vpop.f32.mrb[35].mxu0  ;;  %v597_v2 = vpop.f32.mrb[35].mxu1  ;;  %1214 = vmatmul.mubr.bf16.gmra.mrb[92].mxu0 %v826_v37  ;;  %1375 = vmatmul.mubr.bf16.gmra.mrb[92].mxu1 %v828_v38  ;;  %v734_v62 = vmax.f32 %v399_v43, 0.0 }
 0x139   :  { %v737_v55 = vmax.f32 %v594_v48, 0.0  ;;  %v405_v60 = vadd.f32 %v404_v54, %v2253_v58  ;;  %v598_v61 = vadd.f32 %v597_v2, %v2255_v59  ;;  %v735_v1 = vmax.f32 %v401_v47, 0.0 }
 0x13a   :  { %v738_v63 = vmax.f32 %v403_v52, 0.0  ;;  %v740_v0 = vmax.f32 %v596_v53, 0.0 }
 0x13b   :  { %v739_v3 = vmax.f32 %v405_v60, 0.0  ;;  %v741_v4 = vmax.f32 %v598_v61, 0.0 }
 0x13c   :  { %v830_v5 = vpack.c.bf16 %v738_v63, %v734_v62  ;;  %v832_v6 = vpack.c.bf16 %v740_v0, %v736_v51 }
 0x13d   :  { %v831_v7 = vpack.c.bf16 %v739_v3, %v735_v1  ;;  %v833_v8 = vpack.c.bf16 %v741_v4, %v737_v55  ;;  %v408_v9 = vpop.f32.mrb[36].mxu0  ;;  %v601_v10 = vpop.f32.mrb[36].mxu1 }
 0x13e   :  { %v409_v11 = vadd.f32 %v408_v9, %v2249_v56  ;;  %v602_v12 = vadd.f32 %v601_v10, %v2251_v57  ;;  %v410_v13 = vpop.f32.mrb[37].mxu0  ;;  %v603_v14 = vpop.f32.mrb[37].mxu1 }
 0x13f   :  { %v411_v15 = vadd.f32 %v410_v13, %v2253_v58  ;;  %v604_v16 = vadd.f32 %v603_v14, %v2255_v59  ;;  %v412_v17 = vpop.f32.mrb[38].mxu0  ;;  %v605_v18 = vpop.f32.mrb[38].mxu1  ;;  %1221 = vmatprep.mubr.bf16.mxu0 %v831_v7  ;;  %1382 = vmatprep.mubr.bf16.mxu1 %v833_v8 }
 0x140   :  { %v744_v19 = vmax.f32 %v602_v12, 0.0  ;;  %v413_v20 = vadd.f32 %v412_v17, %v2249_v56  ;;  %v606_v21 = vadd.f32 %v605_v18, %v2251_v57  ;;  %v414_v22 = vpop.f32.mrb[39].mxu0  ;;  %v607_v23 = vpop.f32.mrb[39].mxu1  ;;  %1222 = vmatmul.mubr.bf16.gmra.mrb[96].mxu0 %v830_v5  ;;  %1383 = vmatmul.mubr.bf16.gmra.mrb[96].mxu1 %v832_v6  ;;  %v742_v27 = vmax.f32 %v409_v11, 0.0 }
 0x141   :  { %v745_v24 = vmax.f32 %v604_v16, 0.0  ;;  %v415_v25 = vadd.f32 %v414_v22, %v2253_v58  ;;  %v608_v26 = vadd.f32 %v607_v23, %v2255_v59  ;;  %v743_v30 = vmax.f32 %v411_v15, 0.0 }
 0x142   :  { %v746_v28 = vmax.f32 %v413_v20, 0.0  ;;  %v748_v29 = vmax.f32 %v606_v21, 0.0 }
 0x143   :  { %v747_v31 = vmax.f32 %v415_v25, 0.0  ;;  %v749_v32 = vmax.f32 %v608_v26, 0.0 }
 0x144   :  { %v834_v33 = vpack.c.bf16 %v746_v28, %v742_v27  ;;  %v836_v34 = vpack.c.bf16 %v748_v29, %v744_v19 }
 0x145   :  { %v835_v35 = vpack.c.bf16 %v747_v31, %v743_v30  ;;  %v837_v36 = vpack.c.bf16 %v749_v32, %v745_v24  ;;  %v418_v37 = vpop.f32.mrb[40].mxu0  ;;  %v611_v38 = vpop.f32.mrb[40].mxu1 }
 0x146   :  { %v419_v39 = vadd.f32 %v418_v37, %v2249_v56  ;;  %v612_v40 = vadd.f32 %v611_v38, %v2251_v57  ;;  %v420_v41 = vpop.f32.mrb[41].mxu0  ;;  %v613_v42 = vpop.f32.mrb[41].mxu1 }
 0x147   :  { %v421_v43 = vadd.f32 %v420_v41, %v2253_v58  ;;  %v614_v44 = vadd.f32 %v613_v42, %v2255_v59  ;;  %v422_v45 = vpop.f32.mrb[42].mxu0  ;;  %v615_v46 = vpop.f32.mrb[42].mxu1  ;;  %1229 = vmatprep.mubr.bf16.mxu0 %v835_v35  ;;  %1390 = vmatprep.mubr.bf16.mxu1 %v837_v36 }
 0x148   :  { %v752_v47 = vmax.f32 %v612_v40, 0.0  ;;  %v423_v48 = vadd.f32 %v422_v45, %v2249_v56  ;;  %v616_v49 = vadd.f32 %v615_v46, %v2251_v57  ;;  %v424_v50 = vpop.f32.mrb[43].mxu0  ;;  %v617_v51 = vpop.f32.mrb[43].mxu1  ;;  %1230 = vmatmul.mubr.bf16.gmra.mrb[100].mxu0 %v834_v33  ;;  %1391 = vmatmul.mubr.bf16.gmra.mrb[100].mxu1 %v836_v34  ;;  %v750_v2 = vmax.f32 %v419_v39, 0.0 }
 0x149   :  { %v753_v52 = vmax.f32 %v614_v44, 0.0  ;;  %v425_v53 = vadd.f32 %v424_v50, %v2253_v58  ;;  %v618_v54 = vadd.f32 %v617_v51, %v2255_v59  ;;  %v751_v61 = vmax.f32 %v421_v43, 0.0 }
 0x14a   :  { %v754_v55 = vmax.f32 %v423_v48, 0.0  ;;  %v756_v60 = vmax.f32 %v616_v49, 0.0 }
 0x14b   :  { %v755_v62 = vmax.f32 %v425_v53, 0.0  ;;  %v757_v63 = vmax.f32 %v618_v54, 0.0 }
 0x14c   :  { %v838_v0 = vpack.c.bf16 %v754_v55, %v750_v2  ;;  %v840_v1 = vpack.c.bf16 %v756_v60, %v752_v47 }
 0x14d   :  { %v839_v3 = vpack.c.bf16 %v755_v62, %v751_v61  ;;  %v841_v4 = vpack.c.bf16 %v757_v63, %v753_v52  ;;  %v428_v5 = vpop.f32.mrb[44].mxu0  ;;  %v621_v6 = vpop.f32.mrb[44].mxu1 }
 0x14e   :  { %v429_v7 = vadd.f32 %v428_v5, %v2249_v56  ;;  %v622_v8 = vadd.f32 %v621_v6, %v2251_v57  ;;  %v430_v9 = vpop.f32.mrb[45].mxu0  ;;  %v623_v10 = vpop.f32.mrb[45].mxu1 }
 0x14f   :  { %v431_v11 = vadd.f32 %v430_v9, %v2253_v58  ;;  %v624_v12 = vadd.f32 %v623_v10, %v2255_v59  ;;  %v432_v13 = vpop.f32.mrb[46].mxu0  ;;  %v625_v14 = vpop.f32.mrb[46].mxu1  ;;  %1237 = vmatprep.mubr.bf16.mxu0 %v839_v3  ;;  %1398 = vmatprep.mubr.bf16.mxu1 %v841_v4 }
 0x150   :  { %v760_v15 = vmax.f32 %v622_v8, 0.0  ;;  %v433_v16 = vadd.f32 %v432_v13, %v2249_v56  ;;  %v626_v17 = vadd.f32 %v625_v14, %v2251_v57  ;;  %v434_v18 = vpop.f32.mrb[47].mxu0  ;;  %v627_v19 = vpop.f32.mrb[47].mxu1  ;;  %1238 = vmatmul.mubr.bf16.gmra.mrb[104].mxu0 %v838_v0  ;;  %1399 = vmatmul.mubr.bf16.gmra.mrb[104].mxu1 %v840_v1  ;;  %v758_v23 = vmax.f32 %v429_v7, 0.0 }
 0x151   :  { %v761_v20 = vmax.f32 %v624_v12, 0.0  ;;  %v435_v21 = vadd.f32 %v434_v18, %v2253_v58  ;;  %v628_v22 = vadd.f32 %v627_v19, %v2255_v59  ;;  %v759_v26 = vmax.f32 %v431_v11, 0.0 }
 0x152   :  { %v762_v24 = vmax.f32 %v433_v16, 0.0  ;;  %v764_v25 = vmax.f32 %v626_v17, 0.0 }
 0x153   :  { %v763_v27 = vmax.f32 %v435_v21, 0.0  ;;  %v765_v28 = vmax.f32 %v628_v22, 0.0 }
 0x154   :  { %v842_v29 = vpack.c.bf16 %v762_v24, %v758_v23  ;;  %v844_v30 = vpack.c.bf16 %v764_v25, %v760_v15 }
 0x155   :  { %v843_v31 = vpack.c.bf16 %v763_v27, %v759_v26  ;;  %v845_v32 = vpack.c.bf16 %v765_v28, %v761_v20  ;;  %v438_v33 = vpop.f32.mrb[48].mxu0  ;;  %v631_v34 = vpop.f32.mrb[48].mxu1 }
 0x156   :  { %v439_v35 = vadd.f32 %v438_v33, %v2249_v56  ;;  %v632_v36 = vadd.f32 %v631_v34, %v2251_v57  ;;  %v440_v37 = vpop.f32.mrb[49].mxu0  ;;  %v633_v38 = vpop.f32.mrb[49].mxu1 }
 0x157   :  { %v441_v39 = vadd.f32 %v440_v37, %v2253_v58  ;;  %v634_v40 = vadd.f32 %v633_v38, %v2255_v59  ;;  %v442_v41 = vpop.f32.mrb[50].mxu0  ;;  %v635_v42 = vpop.f32.mrb[50].mxu1  ;;  %1245 = vmatprep.mubr.bf16.mxu0 %v843_v31  ;;  %1406 = vmatprep.mubr.bf16.mxu1 %v845_v32 }
 0x158   :  { %v768_v43 = vmax.f32 %v632_v36, 0.0  ;;  %v443_v44 = vadd.f32 %v442_v41, %v2249_v56  ;;  %v636_v45 = vadd.f32 %v635_v42, %v2251_v57  ;;  %v444_v46 = vpop.f32.mrb[51].mxu0  ;;  %v637_v47 = vpop.f32.mrb[51].mxu1  ;;  %1246 = vmatmul.mubr.bf16.gmra.mrb[108].mxu0 %v842_v29  ;;  %1407 = vmatmul.mubr.bf16.gmra.mrb[108].mxu1 %v844_v30  ;;  %v766_v51 = vmax.f32 %v439_v35, 0.0 }
 0x159   :  { %v769_v48 = vmax.f32 %v634_v40, 0.0  ;;  %v445_v49 = vadd.f32 %v444_v46, %v2253_v58  ;;  %v638_v50 = vadd.f32 %v637_v47, %v2255_v59  ;;  %v767_v54 = vmax.f32 %v441_v39, 0.0 }
 0x15a   :  { %v770_v52 = vmax.f32 %v443_v44, 0.0  ;;  %v772_v53 = vmax.f32 %v636_v45, 0.0 }
 0x15b   :  { %v771_v2 = vmax.f32 %v445_v49, 0.0  ;;  %v773_v55 = vmax.f32 %v638_v50, 0.0 }
 0x15c   :  { %v846_v60 = vpack.c.bf16 %v770_v52, %v766_v51  ;;  %v848_v61 = vpack.c.bf16 %v772_v53, %v768_v43 }
 0x15d   :  { %v847_v62 = vpack.c.bf16 %v771_v2, %v767_v54  ;;  %v849_v63 = vpack.c.bf16 %v773_v55, %v769_v48  ;;  %v448_v0 = vpop.f32.mrb[52].mxu0  ;;  %v641_v1 = vpop.f32.mrb[52].mxu1 }
 0x15e   :  { %v449_v3 = vadd.f32 %v448_v0, %v2249_v56  ;;  %v642_v4 = vadd.f32 %v641_v1, %v2251_v57  ;;  %v450_v5 = vpop.f32.mrb[53].mxu0  ;;  %v643_v6 = vpop.f32.mrb[53].mxu1 }
 0x15f   :  { %v451_v7 = vadd.f32 %v450_v5, %v2253_v58  ;;  %v644_v8 = vadd.f32 %v643_v6, %v2255_v59  ;;  %v452_v9 = vpop.f32.mrb[54].mxu0  ;;  %v645_v10 = vpop.f32.mrb[54].mxu1  ;;  %1253 = vmatprep.mubr.bf16.mxu0 %v847_v62  ;;  %1414 = vmatprep.mubr.bf16.mxu1 %v849_v63 }
 0x160   :  { %v776_v11 = vmax.f32 %v642_v4, 0.0  ;;  %v453_v12 = vadd.f32 %v452_v9, %v2249_v56  ;;  %v646_v13 = vadd.f32 %v645_v10, %v2251_v57  ;;  %v454_v14 = vpop.f32.mrb[55].mxu0  ;;  %v647_v15 = vpop.f32.mrb[55].mxu1  ;;  %1254 = vmatmul.mubr.bf16.gmra.mrb[112].mxu0 %v846_v60  ;;  %1415 = vmatmul.mubr.bf16.gmra.mrb[112].mxu1 %v848_v61  ;;  %v774_v19 = vmax.f32 %v449_v3, 0.0 }
 0x161   :  { %v777_v16 = vmax.f32 %v644_v8, 0.0  ;;  %v455_v17 = vadd.f32 %v454_v14, %v2253_v58  ;;  %v648_v18 = vadd.f32 %v647_v15, %v2255_v59  ;;  %v775_v22 = vmax.f32 %v451_v7, 0.0 }
 0x162   :  { %v778_v20 = vmax.f32 %v453_v12, 0.0  ;;  %v780_v21 = vmax.f32 %v646_v13, 0.0 }
 0x163   :  { %v779_v23 = vmax.f32 %v455_v17, 0.0  ;;  %v781_v24 = vmax.f32 %v648_v18, 0.0 }
 0x164   :  { %v850_v25 = vpack.c.bf16 %v778_v20, %v774_v19  ;;  %v852_v26 = vpack.c.bf16 %v780_v21, %v776_v11 }
 0x165   :  { %v851_v27 = vpack.c.bf16 %v779_v23, %v775_v22  ;;  %v853_v28 = vpack.c.bf16 %v781_v24, %v777_v16  ;;  %v458_v29 = vpop.f32.mrb[56].mxu0  ;;  %v651_v30 = vpop.f32.mrb[56].mxu1 }
 0x166   :  { %v459_v31 = vadd.f32 %v458_v29, %v2249_v56  ;;  %v652_v32 = vadd.f32 %v651_v30, %v2251_v57  ;;  %v460_v33 = vpop.f32.mrb[57].mxu0  ;;  %v653_v34 = vpop.f32.mrb[57].mxu1 }
 0x167   :  { %v461_v35 = vadd.f32 %v460_v33, %v2253_v58  ;;  %v654_v36 = vadd.f32 %v653_v34, %v2255_v59  ;;  %v462_v37 = vpop.f32.mrb[58].mxu0  ;;  %v655_v38 = vpop.f32.mrb[58].mxu1  ;;  %1261 = vmatprep.mubr.bf16.mxu0 %v851_v27  ;;  %1422 = vmatprep.mubr.bf16.mxu1 %v853_v28 }
 0x168   :  { %v784_v39 = vmax.f32 %v652_v32, 0.0  ;;  %v463_v40 = vadd.f32 %v462_v37, %v2249_v56  ;;  %v656_v41 = vadd.f32 %v655_v38, %v2251_v57  ;;  %v464_v42 = vpop.f32.mrb[59].mxu0  ;;  %v657_v43 = vpop.f32.mrb[59].mxu1  ;;  %1262 = vmatmul.mubr.bf16.gmra.mrb[116].mxu0 %v850_v25  ;;  %1423 = vmatmul.mubr.bf16.gmra.mrb[116].mxu1 %v852_v26  ;;  %v782_v47 = vmax.f32 %v459_v31, 0.0 }
 0x169   :  { %v785_v44 = vmax.f32 %v654_v36, 0.0  ;;  %v465_v45 = vadd.f32 %v464_v42, %v2253_v58  ;;  %v658_v46 = vadd.f32 %v657_v43, %v2255_v59  ;;  %v783_v50 = vmax.f32 %v461_v35, 0.0 }
 0x16a   :  { %v786_v48 = vmax.f32 %v463_v40, 0.0  ;;  %v788_v49 = vmax.f32 %v656_v41, 0.0 }
 0x16b   :  { %v787_v51 = vmax.f32 %v465_v45, 0.0  ;;  %v789_v52 = vmax.f32 %v658_v46, 0.0 }
 0x16c   :  { %v854_v53 = vpack.c.bf16 %v786_v48, %v782_v47  ;;  %v856_v54 = vpack.c.bf16 %v788_v49, %v784_v39 }
 0x16d   :  { %v855_v2 = vpack.c.bf16 %v787_v51, %v783_v50  ;;  %v857_v55 = vpack.c.bf16 %v789_v52, %v785_v44  ;;  %v468_v60 = vpop.f32.mrb[60].mxu0  ;;  %v661_v61 = vpop.f32.mrb[60].mxu1 }
 0x16e   :  { %v469_v62 = vadd.f32 %v468_v60, %v2249_v56  ;;  %v662_v63 = vadd.f32 %v661_v61, %v2251_v57  ;;  %v470_v0 = vpop.f32.mrb[61].mxu0  ;;  %v663_v1 = vpop.f32.mrb[61].mxu1 }
 0x16f   :  { %v471_v3 = vadd.f32 %v470_v0, %v2253_v58  ;;  %v664_v4 = vadd.f32 %v663_v1, %v2255_v59  ;;  %v472_v5 = vpop.f32.mrb[62].mxu0  ;;  %v665_v6 = vpop.f32.mrb[62].mxu1  ;;  %1269 = vmatprep.mubr.bf16.mxu0 %v855_v2  ;;  %1430 = vmatprep.mubr.bf16.mxu1 %v857_v55 }
 0x170   :  { %v792_v7 = vmax.f32 %v662_v63, 0.0  ;;  %v473_v8 = vadd.f32 %v472_v5, %v2249_v56  ;;  %v666_v9 = vadd.f32 %v665_v6, %v2251_v57  ;;  %v474_v10 = vpop.f32.mrb[63].mxu0  ;;  %v667_v11 = vpop.f32.mrb[63].mxu1  ;;  %1270 = vmatmul.mubr.bf16.gmra.mrb[120].mxu0 %v854_v53  ;;  %1431 = vmatmul.mubr.bf16.gmra.mrb[120].mxu1 %v856_v54  ;;  %v790_v15 = vmax.f32 %v469_v62, 0.0 }
 0x171   :  { %v793_v12 = vmax.f32 %v664_v4, 0.0  ;;  %v475_v13 = vadd.f32 %v474_v10, %v2253_v58  ;;  %v668_v14 = vadd.f32 %v667_v11, %v2255_v59  ;;  %v791_v18 = vmax.f32 %v471_v3, 0.0  ;;  %v2388_v58 = vld [vmem:[%s2438_s4] ss:$0 sm:$0xff]  ;;  %s1893_s4 = smov [#allocation2]  }
 0x172   :  { %v794_v16 = vmax.f32 %v473_v8, 0.0  ;;  %v796_v17 = vmax.f32 %v666_v9, 0.0  ;;  %s1484_s30 = sshll.u32 %s1893_s4, 4  ;;  %s1485_s30 = int_to_ptr.vmem [resolvable:$true] %s1484_s30 }
 0x173   :  { %v795_v19 = vmax.f32 %v475_v13, 0.0  ;;  %v797_v20 = vmax.f32 %v668_v14, 0.0  ;;  %s1868_s6 = scalar_lea.vmem %s1485_s30, 4096  ;;  %p1873_p1 = scmp.lt.s32.totalorder %s1485_s30, %s1485_s30 }
 0x174   :  { %v858_v21 = vpack.c.bf16 %v794_v16, %v790_v15  ;;  %v860_v22 = vpack.c.bf16 %v796_v17, %v792_v7  ;;  %p1869_p0 = scmp.ne.s32.totalorder %s1485_s30, %s1868_s6  ;;  %p1874_p2 = scmp.lt.s32.totalorder %s1868_s6, %s1868_s6 }
 0x175   :  { %v859_v56 = vpack.c.bf16 %v795_v19, %v791_v18  ;;  %v861_v23 = vpack.c.bf16 %v797_v20, %v793_v12 }
 0x176   :  { %p1875_p3 = por %p1874_p2, %p1873_p1 }
 0x177   :  { %1277 = vmatprep.mubr.bf16.mxu0 %v859_v56  ;;  %1438 = vmatprep.mubr.bf16.mxu1 %v861_v23 }
 0x178   :  { %1278 = vmatmul.mubr.bf16.gmra.mrb[124].mxu0 %v858_v21  ;;  %1439 = vmatmul.mubr.bf16.gmra.mrb[124].mxu1 %v860_v22  ;;  %p1876_p4 = pnand %p1875_p3, %p1869_p0 }
 0x1d3   :  { %v1576_v57 = vpop.f32.mrb[64].mxu0  ;;  %v1688_v24 = vpop.f32.mrb[64].mxu1 }
 0x1d4   :  { %v1577_v59 = vpop.f32.mrb[65].mxu0  ;;  %v1689_v25 = vpop.f32.mrb[65].mxu1 }
 0x1d5   :  { %v1578_v26 = vadd.f32 %v1577_v59, %v1576_v57  ;;  %v1690_v27 = vadd.f32 %v1689_v25, %v1688_v24  ;;  %v1579_v28 = vpop.f32.mrb[66].mxu0  ;;  %v1691_v29 = vpop.f32.mrb[66].mxu1 }
 0x1d6   :  { %v1580_v30 = vpop.f32.mrb[67].mxu0  ;;  %v1692_v31 = vpop.f32.mrb[67].mxu1 }
 0x1d7   :  { %v1160_v32 = vadd.f32 %v1578_v26, %v2388_v58  ;;  %v1581_v33 = vadd.f32 %v1580_v30, %v1579_v28  ;;  %v1693_v34 = vadd.f32 %v1692_v31, %v1691_v29 }
 0x1d9   :  { %v1321_v35 = vadd.f32 %v1690_v27, %v1160_v32  ;;  %v1163_v36 = vadd.f32 %v1581_v33, %v2388_v58 }
 0x1db   :  { %1447 = vst [vmem:[#allocation2] sm:$0xff] %v1321_v35  ;;  %v1324_v37 = vadd.f32 %v1693_v34, %v1163_v36  ;;  %v1582_v38 = vpop.f32.mrb[68].mxu0  ;;  %v1694_v39 = vpop.f32.mrb[68].mxu1 }
 0x1dc   :  { %v1583_v40 = vpop.f32.mrb[69].mxu0  ;;  %v1695_v41 = vpop.f32.mrb[69].mxu1 }
 0x1dd   :  { %1448 = vst [vmem:[#allocation2 + $0x8] sm:$0xff] %v1324_v37  ;;  %v1584_v42 = vadd.f32 %v1583_v40, %v1582_v38  ;;  %v1696_v43 = vadd.f32 %v1695_v41, %v1694_v39  ;;  %v1585_v44 = vpop.f32.mrb[70].mxu0  ;;  %v1697_v45 = vpop.f32.mrb[70].mxu1 }
 0x1de   :  { %v1586_v46 = vpop.f32.mrb[71].mxu0  ;;  %v1698_v47 = vpop.f32.mrb[71].mxu1 }
 0x1df   :  { %v1168_v48 = vadd.f32 %v1584_v42, %v2388_v58  ;;  %v1587_v49 = vadd.f32 %v1586_v46, %v1585_v44  ;;  %v1699_v50 = vadd.f32 %v1698_v47, %v1697_v45 }
 0x1e1   :  { %v1329_v51 = vadd.f32 %v1696_v43, %v1168_v48  ;;  %v1171_v52 = vadd.f32 %v1587_v49, %v2388_v58 }
 0x1e3   :  { %1449 = vst [vmem:[#allocation2 + $0x10] sm:$0xff] %v1329_v51  ;;  %v1332_v53 = vadd.f32 %v1699_v50, %v1171_v52  ;;  %v1588_v54 = vpop.f32.mrb[72].mxu0  ;;  %v1700_v2 = vpop.f32.mrb[72].mxu1 }
 0x1e4   :  { %v1589_v55 = vpop.f32.mrb[73].mxu0  ;;  %v1701_v60 = vpop.f32.mrb[73].mxu1 }
 0x1e5   :  { %1450 = vst [vmem:[#allocation2 + $0x18] sm:$0xff] %v1332_v53  ;;  %v1590_v61 = vadd.f32 %v1589_v55, %v1588_v54  ;;  %v1702_v62 = vadd.f32 %v1701_v60, %v1700_v2  ;;  %v1591_v63 = vpop.f32.mrb[74].mxu0  ;;  %v1703_v0 = vpop.f32.mrb[74].mxu1 }
 0x1e6   :  { %v1592_v1 = vpop.f32.mrb[75].mxu0  ;;  %v1704_v3 = vpop.f32.mrb[75].mxu1 }
 0x1e7   :  { %v1176_v4 = vadd.f32 %v1590_v61, %v2388_v58  ;;  %v1593_v5 = vadd.f32 %v1592_v1, %v1591_v63  ;;  %v1705_v6 = vadd.f32 %v1704_v3, %v1703_v0 }
 0x1e9   :  { %v1337_v7 = vadd.f32 %v1702_v62, %v1176_v4  ;;  %v1179_v8 = vadd.f32 %v1593_v5, %v2388_v58 }
 0x1eb   :  { %1451 = vst [vmem:[#allocation2 + $0x20] sm:$0xff] %v1337_v7  ;;  %v1340_v9 = vadd.f32 %v1705_v6, %v1179_v8  ;;  %v1594_v10 = vpop.f32.mrb[76].mxu0  ;;  %v1706_v11 = vpop.f32.mrb[76].mxu1 }
 0x1ec   :  { %v1595_v12 = vpop.f32.mrb[77].mxu0  ;;  %v1707_v13 = vpop.f32.mrb[77].mxu1 }
 0x1ed   :  { %1452 = vst [vmem:[#allocation2 + $0x28] sm:$0xff] %v1340_v9  ;;  %v1596_v14 = vadd.f32 %v1595_v12, %v1594_v10  ;;  %v1708_v15 = vadd.f32 %v1707_v13, %v1706_v11  ;;  %v1597_v16 = vpop.f32.mrb[78].mxu0  ;;  %v1709_v17 = vpop.f32.mrb[78].mxu1 }
 0x1ee   :  { %v1598_v18 = vpop.f32.mrb[79].mxu0  ;;  %v1710_v19 = vpop.f32.mrb[79].mxu1 }
 0x1ef   :  { %v1184_v20 = vadd.f32 %v1596_v14, %v2388_v58  ;;  %v1599_v21 = vadd.f32 %v1598_v18, %v1597_v16  ;;  %v1711_v22 = vadd.f32 %v1710_v19, %v1709_v17 }
 0x1f1   :  { %v1345_v56 = vadd.f32 %v1708_v15, %v1184_v20  ;;  %v1187_v23 = vadd.f32 %v1599_v21, %v2388_v58 }
 0x1f3   :  { %1453 = vst [vmem:[#allocation2 + $0x30] sm:$0xff] %v1345_v56  ;;  %v1348_v57 = vadd.f32 %v1711_v22, %v1187_v23  ;;  %v1600_v24 = vpop.f32.mrb[80].mxu0  ;;  %v1712_v59 = vpop.f32.mrb[80].mxu1 }
 0x1f4   :  { %v1601_v25 = vpop.f32.mrb[81].mxu0  ;;  %v1713_v26 = vpop.f32.mrb[81].mxu1 }
 0x1f5   :  { %1454 = vst [vmem:[#allocation2 + $0x38] sm:$0xff] %v1348_v57  ;;  %v1602_v27 = vadd.f32 %v1601_v25, %v1600_v24  ;;  %v1714_v28 = vadd.f32 %v1713_v26, %v1712_v59  ;;  %v1603_v29 = vpop.f32.mrb[82].mxu0  ;;  %v1715_v30 = vpop.f32.mrb[82].mxu1 }
 0x1f6   :  { %v1604_v31 = vpop.f32.mrb[83].mxu0  ;;  %v1716_v32 = vpop.f32.mrb[83].mxu1 }
 0x1f7   :  { %v1192_v33 = vadd.f32 %v1602_v27, %v2388_v58  ;;  %v1605_v34 = vadd.f32 %v1604_v31, %v1603_v29  ;;  %v1717_v35 = vadd.f32 %v1716_v32, %v1715_v30 }
 0x1f9   :  { %v1353_v36 = vadd.f32 %v1714_v28, %v1192_v33  ;;  %v1195_v37 = vadd.f32 %v1605_v34, %v2388_v58 }
 0x1fb   :  { %1455 = vst [vmem:[#allocation2 + $0x40] sm:$0xff] %v1353_v36  ;;  %v1356_v38 = vadd.f32 %v1717_v35, %v1195_v37  ;;  %v1606_v39 = vpop.f32.mrb[84].mxu0  ;;  %v1718_v40 = vpop.f32.mrb[84].mxu1 }
 0x1fc   :  { %v1607_v41 = vpop.f32.mrb[85].mxu0  ;;  %v1719_v42 = vpop.f32.mrb[85].mxu1 }
 0x1fd   :  { %1456 = vst [vmem:[#allocation2 + $0x48] sm:$0xff] %v1356_v38  ;;  %v1608_v43 = vadd.f32 %v1607_v41, %v1606_v39  ;;  %v1720_v44 = vadd.f32 %v1719_v42, %v1718_v40  ;;  %v1609_v45 = vpop.f32.mrb[86].mxu0  ;;  %v1721_v46 = vpop.f32.mrb[86].mxu1 }
 0x1fe   :  { %v1610_v47 = vpop.f32.mrb[87].mxu0  ;;  %v1722_v48 = vpop.f32.mrb[87].mxu1 }
 0x1ff   :  { %v1200_v49 = vadd.f32 %v1608_v43, %v2388_v58  ;;  %v1611_v50 = vadd.f32 %v1610_v47, %v1609_v45  ;;  %v1723_v51 = vadd.f32 %v1722_v48, %v1721_v46 }
 0x201   :  { %v1361_v52 = vadd.f32 %v1720_v44, %v1200_v49  ;;  %v1203_v53 = vadd.f32 %v1611_v50, %v2388_v58 }
 0x203   :  { %1457 = vst [vmem:[#allocation2 + $0x50] sm:$0xff] %v1361_v52  ;;  %v1364_v54 = vadd.f32 %v1723_v51, %v1203_v53  ;;  %v1612_v2 = vpop.f32.mrb[88].mxu0  ;;  %v1724_v55 = vpop.f32.mrb[88].mxu1 }
 0x204   :  { %v1613_v60 = vpop.f32.mrb[89].mxu0  ;;  %v1725_v61 = vpop.f32.mrb[89].mxu1 }
 0x205   :  { %1458 = vst [vmem:[#allocation2 + $0x58] sm:$0xff] %v1364_v54  ;;  %v1614_v62 = vadd.f32 %v1613_v60, %v1612_v2  ;;  %v1726_v63 = vadd.f32 %v1725_v61, %v1724_v55  ;;  %v1615_v0 = vpop.f32.mrb[90].mxu0  ;;  %v1727_v1 = vpop.f32.mrb[90].mxu1 }
 0x206   :  { %v1616_v3 = vpop.f32.mrb[91].mxu0  ;;  %v1728_v4 = vpop.f32.mrb[91].mxu1 }
 0x207   :  { %v1208_v5 = vadd.f32 %v1614_v62, %v2388_v58  ;;  %v1617_v6 = vadd.f32 %v1616_v3, %v1615_v0  ;;  %v1729_v7 = vadd.f32 %v1728_v4, %v1727_v1 }
 0x209   :  { %v1369_v8 = vadd.f32 %v1726_v63, %v1208_v5  ;;  %v1211_v9 = vadd.f32 %v1617_v6, %v2388_v58 }
 0x20b   :  { %1459 = vst [vmem:[#allocation2 + $0x60] sm:$0xff] %v1369_v8  ;;  %v1372_v10 = vadd.f32 %v1729_v7, %v1211_v9  ;;  %v1618_v11 = vpop.f32.mrb[92].mxu0  ;;  %v1730_v12 = vpop.f32.mrb[92].mxu1 }
 0x20c   :  { %v1619_v13 = vpop.f32.mrb[93].mxu0  ;;  %v1731_v14 = vpop.f32.mrb[93].mxu1 }
 0x20d   :  { %1460 = vst [vmem:[#allocation2 + $0x68] sm:$0xff] %v1372_v10  ;;  %v1620_v15 = vadd.f32 %v1619_v13, %v1618_v11  ;;  %v1732_v16 = vadd.f32 %v1731_v14, %v1730_v12  ;;  %v1621_v17 = vpop.f32.mrb[94].mxu0  ;;  %v1733_v18 = vpop.f32.mrb[94].mxu1 }
 0x20e   :  { %v1622_v19 = vpop.f32.mrb[95].mxu0  ;;  %v1734_v20 = vpop.f32.mrb[95].mxu1 }
 0x20f   :  { %v1216_v21 = vadd.f32 %v1620_v15, %v2388_v58  ;;  %v1623_v22 = vadd.f32 %v1622_v19, %v1621_v17  ;;  %v1735_v56 = vadd.f32 %v1734_v20, %v1733_v18 }
 0x211   :  { %v1377_v23 = vadd.f32 %v1732_v16, %v1216_v21  ;;  %v1219_v57 = vadd.f32 %v1623_v22, %v2388_v58 }
 0x213   :  { %1461 = vst [vmem:[#allocation2 + $0x70] sm:$0xff] %v1377_v23  ;;  %v1380_v24 = vadd.f32 %v1735_v56, %v1219_v57  ;;  %v1624_v59 = vpop.f32.mrb[96].mxu0  ;;  %v1736_v25 = vpop.f32.mrb[96].mxu1 }
 0x214   :  { %v1625_v26 = vpop.f32.mrb[97].mxu0  ;;  %v1737_v27 = vpop.f32.mrb[97].mxu1 }
 0x215   :  { %1462 = vst [vmem:[#allocation2 + $0x78] sm:$0xff] %v1380_v24  ;;  %v1626_v28 = vadd.f32 %v1625_v26, %v1624_v59  ;;  %v1738_v29 = vadd.f32 %v1737_v27, %v1736_v25  ;;  %v1627_v30 = vpop.f32.mrb[98].mxu0  ;;  %v1739_v31 = vpop.f32.mrb[98].mxu1 }
 0x216   :  { %v1628_v32 = vpop.f32.mrb[99].mxu0  ;;  %v1740_v33 = vpop.f32.mrb[99].mxu1 }
 0x217   :  { %v1224_v34 = vadd.f32 %v1626_v28, %v2388_v58  ;;  %v1629_v35 = vadd.f32 %v1628_v32, %v1627_v30  ;;  %v1741_v36 = vadd.f32 %v1740_v33, %v1739_v31 }
 0x219   :  { %v1385_v37 = vadd.f32 %v1738_v29, %v1224_v34  ;;  %v1227_v38 = vadd.f32 %v1629_v35, %v2388_v58 }
 0x21b   :  { %1463 = vst [vmem:[#allocation2 + $0x80] sm:$0xff] %v1385_v37  ;;  %v1388_v39 = vadd.f32 %v1741_v36, %v1227_v38  ;;  %v1630_v40 = vpop.f32.mrb[100].mxu0  ;;  %v1742_v41 = vpop.f32.mrb[100].mxu1 }
 0x21c   :  { %v1631_v42 = vpop.f32.mrb[101].mxu0  ;;  %v1743_v43 = vpop.f32.mrb[101].mxu1 }
 0x21d   :  { %1464 = vst [vmem:[#allocation2 + $0x88] sm:$0xff] %v1388_v39  ;;  %v1632_v44 = vadd.f32 %v1631_v42, %v1630_v40  ;;  %v1744_v45 = vadd.f32 %v1743_v43, %v1742_v41  ;;  %v1633_v46 = vpop.f32.mrb[102].mxu0  ;;  %v1745_v47 = vpop.f32.mrb[102].mxu1 }
 0x21e   :  { %v1634_v48 = vpop.f32.mrb[103].mxu0  ;;  %v1746_v49 = vpop.f32.mrb[103].mxu1 }
 0x21f   :  { %v1232_v50 = vadd.f32 %v1632_v44, %v2388_v58  ;;  %v1635_v51 = vadd.f32 %v1634_v48, %v1633_v46  ;;  %v1747_v52 = vadd.f32 %v1746_v49, %v1745_v47 }
 0x221   :  { %v1393_v53 = vadd.f32 %v1744_v45, %v1232_v50  ;;  %v1235_v54 = vadd.f32 %v1635_v51, %v2388_v58 }
 0x223   :  { %1465 = vst [vmem:[#allocation2 + $0x90] sm:$0xff] %v1393_v53  ;;  %v1396_v2 = vadd.f32 %v1747_v52, %v1235_v54  ;;  %v1636_v55 = vpop.f32.mrb[104].mxu0  ;;  %v1748_v60 = vpop.f32.mrb[104].mxu1 }
 0x224   :  { %v1637_v61 = vpop.f32.mrb[105].mxu0  ;;  %v1749_v62 = vpop.f32.mrb[105].mxu1 }
 0x225   :  { %1466 = vst [vmem:[#allocation2 + $0x98] sm:$0xff] %v1396_v2  ;;  %v1638_v63 = vadd.f32 %v1637_v61, %v1636_v55  ;;  %v1750_v0 = vadd.f32 %v1749_v62, %v1748_v60  ;;  %v1639_v1 = vpop.f32.mrb[106].mxu0  ;;  %v1751_v3 = vpop.f32.mrb[106].mxu1 }
 0x226   :  { %v1640_v4 = vpop.f32.mrb[107].mxu0  ;;  %v1752_v5 = vpop.f32.mrb[107].mxu1 }
 0x227   :  { %v1240_v6 = vadd.f32 %v1638_v63, %v2388_v58  ;;  %v1641_v7 = vadd.f32 %v1640_v4, %v1639_v1  ;;  %v1753_v8 = vadd.f32 %v1752_v5, %v1751_v3 }
 0x229   :  { %v1401_v9 = vadd.f32 %v1750_v0, %v1240_v6  ;;  %v1243_v10 = vadd.f32 %v1641_v7, %v2388_v58 }
 0x22b   :  { %1467 = vst [vmem:[#allocation2 + $0xa0] sm:$0xff] %v1401_v9  ;;  %v1404_v11 = vadd.f32 %v1753_v8, %v1243_v10  ;;  %v1642_v12 = vpop.f32.mrb[108].mxu0  ;;  %v1754_v13 = vpop.f32.mrb[108].mxu1 }
 0x22c   :  { %v1643_v14 = vpop.f32.mrb[109].mxu0  ;;  %v1755_v15 = vpop.f32.mrb[109].mxu1 }
 0x22d   :  { %1468 = vst [vmem:[#allocation2 + $0xa8] sm:$0xff] %v1404_v11  ;;  %v1644_v16 = vadd.f32 %v1643_v14, %v1642_v12  ;;  %v1756_v17 = vadd.f32 %v1755_v15, %v1754_v13  ;;  %v1645_v18 = vpop.f32.mrb[110].mxu0  ;;  %v1757_v19 = vpop.f32.mrb[110].mxu1 }
 0x22e   :  { %v1646_v20 = vpop.f32.mrb[111].mxu0  ;;  %v1758_v21 = vpop.f32.mrb[111].mxu1 }
 0x22f   :  { %v1248_v22 = vadd.f32 %v1644_v16, %v2388_v58  ;;  %v1647_v56 = vadd.f32 %v1646_v20, %v1645_v18  ;;  %v1759_v23 = vadd.f32 %v1758_v21, %v1757_v19 }
 0x231   :  { %v1409_v57 = vadd.f32 %v1756_v17, %v1248_v22  ;;  %v1251_v24 = vadd.f32 %v1647_v56, %v2388_v58 }
 0x233   :  { %1469 = vst [vmem:[#allocation2 + $0xb0] sm:$0xff] %v1409_v57  ;;  %v1412_v59 = vadd.f32 %v1759_v23, %v1251_v24  ;;  %v1648_v25 = vpop.f32.mrb[112].mxu0  ;;  %v1760_v26 = vpop.f32.mrb[112].mxu1 }
 0x234   :  { %v1649_v27 = vpop.f32.mrb[113].mxu0  ;;  %v1761_v28 = vpop.f32.mrb[113].mxu1 }
 0x235   :  { %1470 = vst [vmem:[#allocation2 + $0xb8] sm:$0xff] %v1412_v59  ;;  %v1650_v29 = vadd.f32 %v1649_v27, %v1648_v25  ;;  %v1762_v30 = vadd.f32 %v1761_v28, %v1760_v26  ;;  %v1651_v31 = vpop.f32.mrb[114].mxu0  ;;  %v1763_v32 = vpop.f32.mrb[114].mxu1 }
 0x236   :  { %v1652_v33 = vpop.f32.mrb[115].mxu0  ;;  %v1764_v34 = vpop.f32.mrb[115].mxu1 }
 0x237   :  { %v1256_v35 = vadd.f32 %v1650_v29, %v2388_v58  ;;  %v1653_v36 = vadd.f32 %v1652_v33, %v1651_v31  ;;  %v1765_v37 = vadd.f32 %v1764_v34, %v1763_v32 }
 0x239   :  { %v1417_v38 = vadd.f32 %v1762_v30, %v1256_v35  ;;  %v1259_v39 = vadd.f32 %v1653_v36, %v2388_v58 }
 0x23b   :  { %1471 = vst [vmem:[#allocation2 + $0xc0] sm:$0xff] %v1417_v38  ;;  %v1420_v40 = vadd.f32 %v1765_v37, %v1259_v39  ;;  %v1654_v41 = vpop.f32.mrb[116].mxu0  ;;  %v1766_v42 = vpop.f32.mrb[116].mxu1 }
 0x23c   :  { %v1655_v43 = vpop.f32.mrb[117].mxu0  ;;  %v1767_v44 = vpop.f32.mrb[117].mxu1 }
 0x23d   :  { %1472 = vst [vmem:[#allocation2 + $0xc8] sm:$0xff] %v1420_v40  ;;  %v1656_v45 = vadd.f32 %v1655_v43, %v1654_v41  ;;  %v1768_v46 = vadd.f32 %v1767_v44, %v1766_v42  ;;  %v1657_v47 = vpop.f32.mrb[118].mxu0  ;;  %v1769_v48 = vpop.f32.mrb[118].mxu1 }
 0x23e   :  { %v1658_v49 = vpop.f32.mrb[119].mxu0  ;;  %v1770_v50 = vpop.f32.mrb[119].mxu1 }
 0x23f   :  { %v1264_v51 = vadd.f32 %v1656_v45, %v2388_v58  ;;  %v1659_v52 = vadd.f32 %v1658_v49, %v1657_v47  ;;  %v1771_v53 = vadd.f32 %v1770_v50, %v1769_v48 }
 0x241   :  { %v1425_v54 = vadd.f32 %v1768_v46, %v1264_v51  ;;  %v1267_v2 = vadd.f32 %v1659_v52, %v2388_v58 }
 0x243   :  { %1473 = vst [vmem:[#allocation2 + $0xd0] sm:$0xff] %v1425_v54  ;;  %v1428_v55 = vadd.f32 %v1771_v53, %v1267_v2  ;;  %v1660_v60 = vpop.f32.mrb[120].mxu0  ;;  %v1772_v61 = vpop.f32.mrb[120].mxu1 }
 0x244   :  { %v1661_v62 = vpop.f32.mrb[121].mxu0  ;;  %v1773_v63 = vpop.f32.mrb[121].mxu1 }
 0x245   :  { %1474 = vst [vmem:[#allocation2 + $0xd8] sm:$0xff] %v1428_v55  ;;  %v1662_v0 = vadd.f32 %v1661_v62, %v1660_v60  ;;  %v1774_v1 = vadd.f32 %v1773_v63, %v1772_v61  ;;  %v1663_v3 = vpop.f32.mrb[122].mxu0  ;;  %v1775_v4 = vpop.f32.mrb[122].mxu1 }
 0x246   :  { %v1664_v5 = vpop.f32.mrb[123].mxu0  ;;  %v1776_v6 = vpop.f32.mrb[123].mxu1 }
 0x247   :  { %v1272_v7 = vadd.f32 %v1662_v0, %v2388_v58  ;;  %v1665_v8 = vadd.f32 %v1664_v5, %v1663_v3  ;;  %v1777_v9 = vadd.f32 %v1776_v6, %v1775_v4 }
 0x249   :  { %v1433_v10 = vadd.f32 %v1774_v1, %v1272_v7  ;;  %v1275_v11 = vadd.f32 %v1665_v8, %v2388_v58 }
 0x24b   :  { %1475 = vst [vmem:[#allocation2 + $0xe0] sm:$0xff] %v1433_v10  ;;  %v1436_v12 = vadd.f32 %v1777_v9, %v1275_v11  ;;  %v1666_v13 = vpop.f32.mrb[124].mxu0  ;;  %v1778_v14 = vpop.f32.mrb[124].mxu1 }
 0x24c   :  { %v1667_v15 = vpop.f32.mrb[125].mxu0  ;;  %v1779_v16 = vpop.f32.mrb[125].mxu1 }
 0x24d   :  { %1476 = vst [vmem:[#allocation2 + $0xe8] sm:$0xff] %v1436_v12  ;;  %v1668_v17 = vadd.f32 %v1667_v15, %v1666_v13  ;;  %v1780_v18 = vadd.f32 %v1779_v16, %v1778_v14  ;;  %v1669_v19 = vpop.f32.mrb[126].mxu0  ;;  %v1781_v20 = vpop.f32.mrb[126].mxu1 }
 0x24e   :  { %v1670_v21 = vpop.f32.mrb[127].mxu0  ;;  %v1782_v22 = vpop.f32.mrb[127].mxu1 }
 0x24f   :  { %v1280_v56 = vadd.f32 %v1668_v17, %v2388_v58  ;;  %v1671_v23 = vadd.f32 %v1670_v21, %v1669_v19  ;;  %v1783_v57 = vadd.f32 %v1782_v22, %v1781_v20 }
 0x251   :  { %v1441_v24 = vadd.f32 %v1780_v18, %v1280_v56  ;;  %v1283_v59 = vadd.f32 %v1671_v23, %v2388_v58 }
 0x253   :  { %1477 = vst [vmem:[#allocation2 + $0xf0] sm:$0xff] %v1441_v24  ;;  %v1444_v25 = vadd.f32 %v1783_v57, %v1283_v59 }
 0x255   :  { %1478 = vst [vmem:[#allocation2 + $0xf8] sm:$0xff] %v1444_v25 }
 0x256   :  { %1879 = shalt.err (!%p1876_p4)
}
 0x257   :  { %s1880_s9 = scalar_lea.hbm %s2439_s5, 4096 }
 0x258   :  { %p1881_p5 = scmp.ne.s32.totalorder %s2439_s5, %s1880_s9  ;;  %p1884_p6 = scmp.lt.u32.totalorder %s1880_s9, %s2439_s5 }
 0x25a   :  { %p1886_p7 = pnand %p1884_p6, %p1881_p5 }
 0x25c   :  { %1889 = shalt.err (!%p1886_p7)
}
 0x25d   :  { %s1894_s14 = smov 128   ;;  %s1895_s1 = smov 8  }
 0x25e   :  { %1490 = dma.vmem_to_hbm [thread:$0]  %s1485_s30, 4096, %s2439_s5, [#allocation3], %s1894_s14, %s1894_s14, %s1895_s1  }
 0x25f   :  { %1890 = dma.done.wait [#allocation3], 4096  }
 0x260   :  { %1891 = vsyncadd [#allocation3], 4294963200 }
 0x261   :  { %1494 = vsyncpa [#allocation3], 1 }

</bundles_post_ra>
